<compile_context>
chip_gen: v7x
topology: tpu7x:2x2x1
jax: 0.10.0
libtpu: 0.0.40
codegen_flags: <defaults>
</compile_context>

<pallas_src>
import jax
import jax.numpy as jnp
from jax.experimental import pallas as pl
from jax.experimental.pallas import tpu as pltpu

INPUT_SIZE = 3
HIDDEN_SIZE = 64
NUM_LAYERS = 2
OUT_SIZE = 2


def _gates_to_hc(gates, c_prev):
    """gates: (B, 4H) pre-activation in PyTorch (i, f, g, o) order."""
    H = HIDDEN_SIZE
    i = jax.nn.sigmoid(gates[:, 0 * H:1 * H])
    f = jax.nn.sigmoid(gates[:, 1 * H:2 * H])
    g = jnp.tanh(gates[:, 2 * H:3 * H])
    o = jax.nn.sigmoid(gates[:, 3 * H:4 * H])
    c = f * c_prev + i * g
    h = o * jnp.tanh(c)
    return h, c


def rnn_kernel(x_ref, h0_ref, c0_ref,
               wih0_ref, whh0_ref, b0_ref,
               w1_ref, b1_ref,
               wout_ref, bout_ref,
               out_ref, hn_ref, cn_ref,
               gx0_ref, h1_all_ref):
    H = HIDDEN_SIZE
    B = hn_ref.shape[1]
    TB = x_ref.shape[0]
    T = TB // B

    # --- Hoisted layer-0 input projection: one big matmul outside the loop. ---
    gx0_ref[...] = (
        jnp.dot(x_ref[...], wih0_ref[...], preferred_element_type=jnp.float32)
        + b0_ref[...]
    )

    whh0 = whh0_ref[...]
    w1 = w1_ref[...]
    b1 = b1_ref[...]

    def step(t, carry):
        h0, c0, h1, c1 = carry
        row = pl.multiple_of(t * B, B)

        # Layer 0: only the recurrent matmul stays on the serial chain.
        gates0 = gx0_ref[pl.ds(row, B), :] + jnp.dot(
            h0, whh0, preferred_element_type=jnp.float32)
        h0n, c0n = _gates_to_hc(gates0, c0)

        # Layer 1 (dropout between layers is identity in eval mode):
        # fused input + recurrent matmul: [h0n, h1] @ [W_ih1^T ; W_hh1^T].
        inp1 = jnp.concatenate([h0n, h1], axis=1)          # (B, 2H)
        gates1 = jnp.dot(inp1, w1, preferred_element_type=jnp.float32) + b1
        h1n, c1n = _gates_to_hc(gates1, c1)

        h1_all_ref[pl.ds(row, B), :] = h1n
        return (h0n, c0n, h1n, c1n)

    init = (h0_ref[0], c0_ref[0], h0_ref[1], c0_ref[1])
    h0f, c0f, h1f, c1f = jax.lax.fori_loop(0, T, step, init, unroll=True)

    hn_ref[0] = h0f
    hn_ref[1] = h1f
    cn_ref[0] = c0f
    cn_ref[1] = c1f

    # --- Output head, batched over all timesteps (outside the loop). ---
    y = (jnp.dot(h1_all_ref[...], wout_ref[...],
                 preferred_element_type=jnp.float32) + bout_ref[...])
    lane = jax.lax.broadcasted_iota(jnp.int32, y.shape, 1)   # (T*B, 2)
    u_min = jnp.where(lane == 0, 0.0, -3.0)
    u_max = jnp.where(lane == 0, 2.0, 3.0)
    out_ref[...] = u_min + (u_max - u_min) * (jnp.tanh(y) + 1.0) * 0.5


@jax.jit
def rnn_forward(x_btc, h0, c0, params):
    """x_btc: (B, T, INPUT_SIZE) batch-first, like the PyTorch module."""
    B, T, I = x_btc.shape
    H, L = HIDDEN_SIZE, NUM_LAYERS
    (wih0_t, whh0_t, b0, w1, b1, wout_t, bout) = params

    # Pad batch to a multiple of the f32 sublane height (8) so vregs / MXU rows
    # are not mostly empty. Rows are independent, so padding is sliced off below.
    B_pad = max(8, ((B + 7) // 8) * 8)
    if B_pad != B:
        pad = B_pad - B
        x_btc = jnp.pad(x_btc, ((0, pad), (0, 0), (0, 0)))
        h0 = jnp.pad(h0, ((0, 0), (0, pad), (0, 0)))
        c0 = jnp.pad(c0, ((0, 0), (0, pad), (0, 0)))

    # Time-major, flattened so the layer-0 input projection is a single matmul.
    x_flat = jnp.transpose(x_btc, (1, 0, 2)).reshape(T * B_pad, I)

    def full(shape):
        n = len(shape)
        return pl.BlockSpec(shape, lambda i: (0,) * n)

    out_flat, h_n, c_n = pl.pallas_call(
        rnn_kernel,
        out_shape=(
            jax.ShapeDtypeStruct((T * B_pad, OUT_SIZE), jnp.float32),
            jax.ShapeDtypeStruct((L, B_pad, H), jnp.float32),
            jax.ShapeDtypeStruct((L, B_pad, H), jnp.float32),
        ),
        grid_spec=pltpu.PrefetchScalarGridSpec(
            num_scalar_prefetch=0,
            grid=(1,),
            in_specs=[
                full((T * B_pad, I)),          # x (time-major, flattened)
                full((L, B_pad, H)),           # h0
                full((L, B_pad, H)),           # c0
                full((I, 4 * H)),              # W_ih0^T
                full((H, 4 * H)),              # W_hh0^T
                full((1, 4 * H)),              # b_ih0 + b_hh0
                full((2 * H, 4 * H)),          # [W_ih1^T ; W_hh1^T] packed
                full((1, 4 * H)),              # b_ih1 + b_hh1
                full((H, OUT_SIZE)),           # W_out^T
                full((1, OUT_SIZE)),           # b_out
            ],
            out_specs=[
                full((T * B_pad, OUT_SIZE)),   # per-step outputs (flattened)
                full((L, B_pad, H)),           # h_n
                full((L, B_pad, H)),           # c_n
            ],
            scratch_shapes=[
                pltpu.VMEM((T * B_pad, 4 * H), jnp.float32),  # hoisted x-gates
                pltpu.VMEM((T * B_pad, H), jnp.float32),      # layer-1 h per step
            ],
        ),
        compiler_params=pltpu.CompilerParams(
            dimension_semantics=("arbitrary",)),
    )(x_flat, h0, c0, wih0_t, whh0_t, b0, w1, b1, wout_t, bout)

    out = out_flat.reshape(T, B_pad, OUT_SIZE)[:, :B, :]
    out = jnp.transpose(out, (1, 0, 2))                       # (B, T, 2)
    return out, (h_n[:, :B, :], c_n[:, :B, :])


def init_params(key):
    """Deterministic init matching the PyTorch module's parameter shapes."""
    H, I = HIDDEN_SIZE, INPUT_SIZE
    k = 1.0 / jnp.sqrt(H)
    keys = jax.random.split(key, 10)
    u = lambda kk, shape: jax.random.uniform(kk, shape, jnp.float32, -k, k)

    # Layer 0: W_ih (4H, I), W_hh (4H, H), b_ih (4H,), b_hh (4H,)
    w_ih0 = u(keys[0], (4 * H, I))
    w_hh0 = u(keys[1], (4 * H, H))
    b_ih0 = u(keys[2], (4 * H,))
    b_hh0 = u(keys[3], (4 * H,))
    # Layer 1: W_ih (4H, H), W_hh (4H, H)
    w_ih1 = u(keys[4], (4 * H, H))
    w_hh1 = u(keys[5], (4 * H, H))
    b_ih1 = u(keys[6], (4 * H,))
    b_hh1 = u(keys[7], (4 * H,))
    # Output Linear(H, 2)
    w_out = u(keys[8], (OUT_SIZE, H))
    b_out = u(keys[9], (OUT_SIZE,))

    w1_packed = jnp.concatenate([w_ih1.T, w_hh1.T], axis=0)   # (2H, 4H)
    return (
        w_ih0.T, w_hh0.T, (b_ih0 + b_hh0).reshape(1, 4 * H),
        w1_packed, (b_ih1 + b_hh1).reshape(1, 4 * H),
        w_out.T, b_out.reshape(1, OUT_SIZE),
    )


def _lstm_cell_ref(inp, h_prev, c_prev, wih_t, whh_t, b):
    H = HIDDEN_SIZE
    gates = inp @ wih_t + h_prev @ whh_t + b
    i = jax.nn.sigmoid(gates[:, 0 * H:1 * H])
    f = jax.nn.sigmoid(gates[:, 1 * H:2 * H])
    g = jnp.tanh(gates[:, 2 * H:3 * H])
    o = jax.nn.sigmoid(gates[:, 3 * H:4 * H])
    c = f * c_prev + i * g
    h = o * jnp.tanh(c)
    return h, c


def rnn_reference(x_btc, h0, c0, params):
    """Pure-JAX reference of the PyTorch forward (eval mode)."""
    (wih0_t, whh0_t, b0, w1, b1, wout_t, bout) = params
    H = HIDDEN_SIZE
    wih1_t, whh1_t = w1[:H], w1[H:]
    B, T, _ = x_btc.shape
    h = [h0[0], h0[1]]
    c = [c0[0], c0[1]]
    outs = []
    u_min = jnp.array([[0.0, -3.0]], jnp.float32)
    u_max = jnp.array([[2.0, 3.0]], jnp.float32)
    for t in range(T):
        x_t = x_btc[:, t, :]
        h[0], c[0] = _lstm_cell_ref(x_t, h[0], c[0], wih0_t, whh0_t, b0)
        h[1], c[1] = _lstm_cell_ref(h[0], h[1], c[1], wih1_t, whh1_t, b1)
        y = h[1] @ wout_t + bout
        outs.append(u_min + (u_max - u_min) * (jnp.tanh(y) + 1.0) / 2.0)
    return jnp.stack(outs, axis=1), (jnp.stack(h), jnp.stack(c))


if __name__ == "__main__":
    B, T = 2, 8
    key = jax.random.PRNGKey(0)
    k_x, k_h, k_c, k_p = jax.random.split(key, 4)

    x = jax.random.normal(k_x, (B, T, INPUT_SIZE), jnp.float32)
    h0 = jax.random.normal(k_h, (NUM_LAYERS, B, HIDDEN_SIZE), jnp.float32) * 0.1
    c0 = jax.random.normal(k_c, (NUM_LAYERS, B, HIDDEN_SIZE), jnp.float32) * 0.1
    params = init_params(k_p)

    out, (h_n, c_n) = rnn_forward(x, h0, c0, params)
    jax.block_until_ready((out, h_n, c_n))

    ref_out, (ref_h, ref_c) = rnn_reference(x, h0, c0, params)
    assert out.shape == (B, T, OUT_SIZE)
    assert h_n.shape == (NUM_LAYERS, B, HIDDEN_SIZE)
    assert c_n.shape == (NUM_LAYERS, B, HIDDEN_SIZE)
    assert jnp.allclose(out, ref_out, atol=1e-5, rtol=1e-5)
    assert jnp.allclose(h_n, ref_h, atol=1e-5, rtol=1e-5)
    assert jnp.allclose(c_n, ref_c, atol=1e-5, rtol=1e-5)

    print("KERNEL_OK")
</pallas_src>

<mosaic_0001>
module attributes {stable_mosaic.version = 11 : i64} {
  func.func @rnn_kernel(%arg0: i32, %arg1: memref<64x3xf32, #tpu.memory_space<vmem>>, %arg2: memref<2x8x64xf32, #tpu.memory_space<vmem>>, %arg3: memref<2x8x64xf32, #tpu.memory_space<vmem>>, %arg4: memref<3x256xf32, #tpu.memory_space<vmem>>, %arg5: memref<64x256xf32, #tpu.memory_space<vmem>>, %arg6: memref<1x256xf32, #tpu.memory_space<vmem>>, %arg7: memref<128x256xf32, #tpu.memory_space<vmem>>, %arg8: memref<1x256xf32, #tpu.memory_space<vmem>>, %arg9: memref<64x2xf32, #tpu.memory_space<vmem>>, %arg10: memref<1x2xf32, #tpu.memory_space<vmem>>, %arg11: memref<64x2xf32, #tpu.memory_space<vmem>>, %arg12: memref<2x8x64xf32, #tpu.memory_space<vmem>>, %arg13: memref<2x8x64xf32, #tpu.memory_space<vmem>>, %arg14: memref<64x256xf32, #tpu.memory_space<vmem>>, %arg15: memref<64x64xf32, #tpu.memory_space<vmem>>) attributes {dimension_semantics = [#tpu.dimension_semantics<arbitrary>], iteration_bounds = array<i64: 1>, scalar_prefetch = 0 : i64, scratch_operands = 2 : i64, tpu.core_type = #tpu.core_type<tc>, window_params = [{pipeline_mode = #tpu.pipeline_mode<synchronous>, transform_indices = @transform_0, window_bounds = array<i64: 64, 3>}, {pipeline_mode = #tpu.pipeline_mode<synchronous>, transform_indices = @transform_1, window_bounds = array<i64: 2, 8, 64>}, {pipeline_mode = #tpu.pipeline_mode<synchronous>, transform_indices = @transform_2, window_bounds = array<i64: 2, 8, 64>}, {pipeline_mode = #tpu.pipeline_mode<synchronous>, transform_indices = @transform_3, window_bounds = array<i64: 3, 256>}, {pipeline_mode = #tpu.pipeline_mode<synchronous>, transform_indices = @transform_4, window_bounds = array<i64: 64, 256>}, {pipeline_mode = #tpu.pipeline_mode<synchronous>, transform_indices = @transform_5, window_bounds = array<i64: 1, 256>}, {pipeline_mode = #tpu.pipeline_mode<synchronous>, transform_indices = @transform_6, window_bounds = array<i64: 128, 256>}, {pipeline_mode = #tpu.pipeline_mode<synchronous>, transform_indices = @transform_7, window_bounds = array<i64: 1, 256>}, {pipeline_mode = #tpu.pipeline_mode<synchronous>, transform_indices = @transform_8, window_bounds = array<i64: 64, 2>}, {pipeline_mode = #tpu.pipeline_mode<synchronous>, transform_indices = @transform_9, window_bounds = array<i64: 1, 2>}, {pipeline_mode = #tpu.pipeline_mode<synchronous>, transform_indices = @transform_10, window_bounds = array<i64: 64, 2>}, {pipeline_mode = #tpu.pipeline_mode<synchronous>, transform_indices = @transform_11, window_bounds = array<i64: 2, 8, 64>}, {pipeline_mode = #tpu.pipeline_mode<synchronous>, transform_indices = @transform_12, window_bounds = array<i64: 2, 8, 64>}]} {
    %c0 = arith.constant 0 : index
    %c0_0 = arith.constant 0 : index
    %0 = vector.load %arg1[%c0, %c0_0] : memref<64x3xf32, #tpu.memory_space<vmem>>, vector<64x3xf32>
    %c0_1 = arith.constant 0 : index
    %c0_2 = arith.constant 0 : index
    %1 = vector.load %arg4[%c0_1, %c0_2] : memref<3x256xf32, #tpu.memory_space<vmem>>, vector<3x256xf32>
    %cst = arith.constant dense<0.000000e+00> : vector<64x256xf32>
    %2 = tpu.matmul %0, %1, %cst {dimension_numbers = #tpu.dot_dimension_numbers<[1], [0], [0], [1], [0, 0, 1, 1], [], []>} : vector<64x3xf32>, vector<3x256xf32>, vector<64x256xf32> -> vector<64x256xf32>
    %c0_3 = arith.constant 0 : index
    %c0_4 = arith.constant 0 : index
    %3 = vector.load %arg6[%c0_3, %c0_4] : memref<1x256xf32, #tpu.memory_space<vmem>>, vector<1x256xf32>
    %4 = vector.broadcast %3 : vector<1x256xf32> to vector<64x256xf32>
    %5 = arith.addf %2, %4 : vector<64x256xf32>
    %c0_5 = arith.constant 0 : index
    %c0_6 = arith.constant 0 : index
    %6 = vector.load %arg14[%c0_5, %c0_6] : memref<64x256xf32, #tpu.memory_space<vmem>>, vector<64x256xf32>
    tpu.vector_store %arg14[%c0_5, %c0_6], %5 {strides = array<i32>} : memref<64x256xf32, #tpu.memory_space<vmem>>, vector<64x256xf32>,
    %c0_7 = arith.constant 0 : index
    %c0_8 = arith.constant 0 : index
    %7 = vector.load %arg5[%c0_7, %c0_8] : memref<64x256xf32, #tpu.memory_space<vmem>>, vector<64x256xf32>
    %c0_9 = arith.constant 0 : index
    %c0_10 = arith.constant 0 : index
    %8 = vector.load %arg7[%c0_9, %c0_10] : memref<128x256xf32, #tpu.memory_space<vmem>>, vector<128x256xf32>
    %c0_11 = arith.constant 0 : index
    %c0_12 = arith.constant 0 : index
    %9 = vector.load %arg8[%c0_11, %c0_12] : memref<1x256xf32, #tpu.memory_space<vmem>>, vector<1x256xf32>
    %c0_13 = arith.constant 0 : index
    %c0_14 = arith.constant 0 : index
    %c0_15 = arith.constant 0 : index
    %10 = vector.load %arg2[%c0_13, %c0_14, %c0_15] : memref<2x8x64xf32, #tpu.memory_space<vmem>>, vector<1x8x64xf32>
    %11 = vector.shape_cast %10 : vector<1x8x64xf32> to vector<8x64xf32>
    %c0_16 = arith.constant 0 : index
    %c0_17 = arith.constant 0 : index
    %c0_18 = arith.constant 0 : index
    %12 = vector.load %arg3[%c0_16, %c0_17, %c0_18] : memref<2x8x64xf32, #tpu.memory_space<vmem>>, vector<1x8x64xf32>
    %13 = vector.shape_cast %12 : vector<1x8x64xf32> to vector<8x64xf32>
    %c1 = arith.constant 1 : index
    %c0_19 = arith.constant 0 : index
    %c0_20 = arith.constant 0 : index
    %14 = vector.load %arg2[%c1, %c0_19, %c0_20] : memref<2x8x64xf32, #tpu.memory_space<vmem>>, vector<1x8x64xf32>
    %15 = vector.shape_cast %14 : vector<1x8x64xf32> to vector<8x64xf32>
    %c1_21 = arith.constant 1 : index
    %c0_22 = arith.constant 0 : index
    %c0_23 = arith.constant 0 : index
    %16 = vector.load %arg3[%c1_21, %c0_22, %c0_23] : memref<2x8x64xf32, #tpu.memory_space<vmem>>, vector<1x8x64xf32>
    %17 = vector.shape_cast %16 : vector<1x8x64xf32> to vector<8x64xf32>
    %c0_i32 = arith.constant 0 : i32
    %c8_i32 = arith.constant 8 : i32
    %18 = arith.muli %c0_i32, %c8_i32 : i32
    %19 = tpu.assume_multiple %18, 8 : i32
    %20 = arith.index_cast %19 : i32 to index
    %c0_24 = arith.constant 0 : index
    %21 = vector.load %arg14[%20, %c0_24] : memref<64x256xf32, #tpu.memory_space<vmem>>, vector<8x256xf32>
    %cst_25 = arith.constant dense<0.000000e+00> : vector<8x256xf32>
    %22 = tpu.matmul %11, %7, %cst_25 {dimension_numbers = #tpu.dot_dimension_numbers<[1], [0], [0], [1], [0, 0, 1, 1], [], []>} : vector<8x64xf32>, vector<64x256xf32>, vector<8x256xf32> -> vector<8x256xf32>
    %23 = arith.addf %21, %22 : vector<8x256xf32>
    %24 = vector.extract_strided_slice %23 {offsets = [0, 0], sizes = [8, 64], strides = [1, 1]} : vector<8x256xf32> to vector<8x64xf32>
    %25 = arith.negf %24 : vector<8x64xf32>
    %26 = math.exp %25 : vector<8x64xf32>
    %cst_26 = arith.constant 1.000000e+00 : f32
    %27 = vector.broadcast %cst_26 : f32 to vector<8x64xf32>
    %28 = arith.addf %27, %26 : vector<8x64xf32>
    %29 = arith.divf %27, %28 : vector<8x64xf32>
    %30 = vector.extract_strided_slice %23 {offsets = [0, 64], sizes = [8, 64], strides = [1, 1]} : vector<8x256xf32> to vector<8x64xf32>
    %31 = arith.negf %30 : vector<8x64xf32>
    %32 = math.exp %31 : vector<8x64xf32>
    %cst_27 = arith.constant 1.000000e+00 : f32
    %33 = vector.broadcast %cst_27 : f32 to vector<8x64xf32>
    %34 = arith.addf %33, %32 : vector<8x64xf32>
    %35 = arith.divf %33, %34 : vector<8x64xf32>
    %36 = vector.extract_strided_slice %23 {offsets = [0, 128], sizes = [8, 64], strides = [1, 1]} : vector<8x256xf32> to vector<8x64xf32>
    %37 = math.tanh %36 : vector<8x64xf32>
    %38 = vector.extract_strided_slice %23 {offsets = [0, 192], sizes = [8, 64], strides = [1, 1]} : vector<8x256xf32> to vector<8x64xf32>
    %39 = arith.negf %38 : vector<8x64xf32>
    %40 = math.exp %39 : vector<8x64xf32>
    %cst_28 = arith.constant 1.000000e+00 : f32
    %41 = vector.broadcast %cst_28 : f32 to vector<8x64xf32>
    %42 = arith.addf %41, %40 : vector<8x64xf32>
    %43 = arith.divf %41, %42 : vector<8x64xf32>
    %44 = arith.mulf %35, %13 : vector<8x64xf32>
    %45 = arith.mulf %29, %37 : vector<8x64xf32>
    %46 = arith.addf %44, %45 : vector<8x64xf32>
    %47 = math.tanh %46 : vector<8x64xf32>
    %48 = arith.mulf %43, %47 : vector<8x64xf32>
    %49 = tpu.concatenate %48, %15 in 1 : vector<8x64xf32>, vector<8x64xf32> -> vector<8x128xf32>
    %cst_29 = arith.constant dense<0.000000e+00> : vector<8x256xf32>
    %50 = tpu.matmul %49, %8, %cst_29 {dimension_numbers = #tpu.dot_dimension_numbers<[1], [0], [0], [1], [0, 0, 1, 1], [], []>} : vector<8x128xf32>, vector<128x256xf32>, vector<8x256xf32> -> vector<8x256xf32>
    %51 = vector.broadcast %9 : vector<1x256xf32> to vector<8x256xf32>
    %52 = arith.addf %50, %51 : vector<8x256xf32>
    %53 = vector.extract_strided_slice %52 {offsets = [0, 0], sizes = [8, 64], strides = [1, 1]} : vector<8x256xf32> to vector<8x64xf32>
    %54 = arith.negf %53 : vector<8x64xf32>
    %55 = math.exp %54 : vector<8x64xf32>
    %cst_30 = arith.constant 1.000000e+00 : f32
    %56 = vector.broadcast %cst_30 : f32 to vector<8x64xf32>
    %57 = arith.addf %56, %55 : vector<8x64xf32>
    %58 = arith.divf %56, %57 : vector<8x64xf32>
    %59 = vector.extract_strided_slice %52 {offsets = [0, 64], sizes = [8, 64], strides = [1, 1]} : vector<8x256xf32> to vector<8x64xf32>
    %60 = arith.negf %59 : vector<8x64xf32>
    %61 = math.exp %60 : vector<8x64xf32>
    %cst_31 = arith.constant 1.000000e+00 : f32
    %62 = vector.broadcast %cst_31 : f32 to vector<8x64xf32>
    %63 = arith.addf %62, %61 : vector<8x64xf32>
    %64 = arith.divf %62, %63 : vector<8x64xf32>
    %65 = vector.extract_strided_slice %52 {offsets = [0, 128], sizes = [8, 64], strides = [1, 1]} : vector<8x256xf32> to vector<8x64xf32>
    %66 = math.tanh %65 : vector<8x64xf32>
    %67 = vector.extract_strided_slice %52 {offsets = [0, 192], sizes = [8, 64], strides = [1, 1]} : vector<8x256xf32> to vector<8x64xf32>
    %68 = arith.negf %67 : vector<8x64xf32>
    %69 = math.exp %68 : vector<8x64xf32>
    %cst_32 = arith.constant 1.000000e+00 : f32
    %70 = vector.broadcast %cst_32 : f32 to vector<8x64xf32>
    %71 = arith.addf %70, %69 : vector<8x64xf32>
    %72 = arith.divf %70, %71 : vector<8x64xf32>
    %73 = arith.mulf %64, %17 : vector<8x64xf32>
    %74 = arith.mulf %58, %66 : vector<8x64xf32>
    %75 = arith.addf %73, %74 : vector<8x64xf32>
    %76 = math.tanh %75 : vector<8x64xf32>
    %77 = arith.mulf %72, %76 : vector<8x64xf32>
    %78 = arith.index_cast %19 : i32 to index
    %c0_33 = arith.constant 0 : index
    %79 = vector.load %arg15[%78, %c0_33] : memref<64x64xf32, #tpu.memory_space<vmem>>, vector<8x64xf32>
    tpu.vector_store %arg15[%78, %c0_33], %77 {strides = array<i32>} : memref<64x64xf32, #tpu.memory_space<vmem>>, vector<8x64xf32>,
    %c1_i32 = arith.constant 1 : i32
    %c8_i32_34 = arith.constant 8 : i32
    %80 = arith.muli %c1_i32, %c8_i32_34 : i32
    %81 = tpu.assume_multiple %80, 8 : i32
    %82 = arith.index_cast %81 : i32 to index
    %c0_35 = arith.constant 0 : index
    %83 = vector.load %arg14[%82, %c0_35] : memref<64x256xf32, #tpu.memory_space<vmem>>, vector<8x256xf32>
    %cst_36 = arith.constant dense<0.000000e+00> : vector<8x256xf32>
    %84 = tpu.matmul %48, %7, %cst_36 {dimension_numbers = #tpu.dot_dimension_numbers<[1], [0], [0], [1], [0, 0, 1, 1], [], []>} : vector<8x64xf32>, vector<64x256xf32>, vector<8x256xf32> -> vector<8x256xf32>
    %85 = arith.addf %83, %84 : vector<8x256xf32>
    %86 = vector.extract_strided_slice %85 {offsets = [0, 0], sizes = [8, 64], strides = [1, 1]} : vector<8x256xf32> to vector<8x64xf32>
    %87 = arith.negf %86 : vector<8x64xf32>
    %88 = math.exp %87 : vector<8x64xf32>
    %cst_37 = arith.constant 1.000000e+00 : f32
    %89 = vector.broadcast %cst_37 : f32 to vector<8x64xf32>
    %90 = arith.addf %89, %88 : vector<8x64xf32>
    %91 = arith.divf %89, %90 : vector<8x64xf32>
    %92 = vector.extract_strided_slice %85 {offsets = [0, 64], sizes = [8, 64], strides = [1, 1]} : vector<8x256xf32> to vector<8x64xf32>
    %93 = arith.negf %92 : vector<8x64xf32>
    %94 = math.exp %93 : vector<8x64xf32>
    %cst_38 = arith.constant 1.000000e+00 : f32
    %95 = vector.broadcast %cst_38 : f32 to vector<8x64xf32>
    %96 = arith.addf %95, %94 : vector<8x64xf32>
    %97 = arith.divf %95, %96 : vector<8x64xf32>
    %98 = vector.extract_strided_slice %85 {offsets = [0, 128], sizes = [8, 64], strides = [1, 1]} : vector<8x256xf32> to vector<8x64xf32>
    %99 = math.tanh %98 : vector<8x64xf32>
    %100 = vector.extract_strided_slice %85 {offsets = [0, 192], sizes = [8, 64], strides = [1, 1]} : vector<8x256xf32> to vector<8x64xf32>
    %101 = arith.negf %100 : vector<8x64xf32>
    %102 = math.exp %101 : vector<8x64xf32>
    %cst_39 = arith.constant 1.000000e+00 : f32
    %103 = vector.broadcast %cst_39 : f32 to vector<8x64xf32>
    %104 = arith.addf %103, %102 : vector<8x64xf32>
    %105 = arith.divf %103, %104 : vector<8x64xf32>
    %106 = arith.mulf %97, %46 : vector<8x64xf32>
    %107 = arith.mulf %91, %99 : vector<8x64xf32>
    %108 = arith.addf %106, %107 : vector<8x64xf32>
    %109 = math.tanh %108 : vector<8x64xf32>
    %110 = arith.mulf %105, %109 : vector<8x64xf32>
    %111 = tpu.concatenate %110, %77 in 1 : vector<8x64xf32>, vector<8x64xf32> -> vector<8x128xf32>
    %cst_40 = arith.constant dense<0.000000e+00> : vector<8x256xf32>
    %112 = tpu.matmul %111, %8, %cst_40 {dimension_numbers = #tpu.dot_dimension_numbers<[1], [0], [0], [1], [0, 0, 1, 1], [], []>} : vector<8x128xf32>, vector<128x256xf32>, vector<8x256xf32> -> vector<8x256xf32>
    %113 = vector.broadcast %9 : vector<1x256xf32> to vector<8x256xf32>
    %114 = arith.addf %112, %113 : vector<8x256xf32>
    %115 = vector.extract_strided_slice %114 {offsets = [0, 0], sizes = [8, 64], strides = [1, 1]} : vector<8x256xf32> to vector<8x64xf32>
    %116 = arith.negf %115 : vector<8x64xf32>
    %117 = math.exp %116 : vector<8x64xf32>
    %cst_41 = arith.constant 1.000000e+00 : f32
    %118 = vector.broadcast %cst_41 : f32 to vector<8x64xf32>
    %119 = arith.addf %118, %117 : vector<8x64xf32>
    %120 = arith.divf %118, %119 : vector<8x64xf32>
    %121 = vector.extract_strided_slice %114 {offsets = [0, 64], sizes = [8, 64], strides = [1, 1]} : vector<8x256xf32> to vector<8x64xf32>
    %122 = arith.negf %121 : vector<8x64xf32>
    %123 = math.exp %122 : vector<8x64xf32>
    %cst_42 = arith.constant 1.000000e+00 : f32
    %124 = vector.broadcast %cst_42 : f32 to vector<8x64xf32>
    %125 = arith.addf %124, %123 : vector<8x64xf32>
    %126 = arith.divf %124, %125 : vector<8x64xf32>
    %127 = vector.extract_strided_slice %114 {offsets = [0, 128], sizes = [8, 64], strides = [1, 1]} : vector<8x256xf32> to vector<8x64xf32>
    %128 = math.tanh %127 : vector<8x64xf32>
    %129 = vector.extract_strided_slice %114 {offsets = [0, 192], sizes = [8, 64], strides = [1, 1]} : vector<8x256xf32> to vector<8x64xf32>
    %130 = arith.negf %129 : vector<8x64xf32>
    %131 = math.exp %130 : vector<8x64xf32>
    %cst_43 = arith.constant 1.000000e+00 : f32
    %132 = vector.broadcast %cst_43 : f32 to vector<8x64xf32>
    %133 = arith.addf %132, %131 : vector<8x64xf32>
    %134 = arith.divf %132, %133 : vector<8x64xf32>
    %135 = arith.mulf %126, %75 : vector<8x64xf32>
    %136 = arith.mulf %120, %128 : vector<8x64xf32>
    %137 = arith.addf %135, %136 : vector<8x64xf32>
    %138 = math.tanh %137 : vector<8x64xf32>
    %139 = arith.mulf %134, %138 : vector<8x64xf32>
    %140 = arith.index_cast %81 : i32 to index
    %c0_44 = arith.constant 0 : index
    %141 = vector.load %arg15[%140, %c0_44] : memref<64x64xf32, #tpu.memory_space<vmem>>, vector<8x64xf32>
    tpu.vector_store %arg15[%140, %c0_44], %139 {strides = array<i32>} : memref<64x64xf32, #tpu.memory_space<vmem>>, vector<8x64xf32>,
    %c2_i32 = arith.constant 2 : i32
    %c8_i32_45 = arith.constant 8 : i32
    %142 = arith.muli %c2_i32, %c8_i32_45 : i32
    %143 = tpu.assume_multiple %142, 8 : i32
    %144 = arith.index_cast %143 : i32 to index
    %c0_46 = arith.constant 0 : index
    %145 = vector.load %arg14[%144, %c0_46] : memref<64x256xf32, #tpu.memory_space<vmem>>, vector<8x256xf32>
    %cst_47 = arith.constant dense<0.000000e+00> : vector<8x256xf32>
    %146 = tpu.matmul %110, %7, %cst_47 {dimension_numbers = #tpu.dot_dimension_numbers<[1], [0], [0], [1], [0, 0, 1, 1], [], []>} : vector<8x64xf32>, vector<64x256xf32>, vector<8x256xf32> -> vector<8x256xf32>
    %147 = arith.addf %145, %146 : vector<8x256xf32>
    %148 = vector.extract_strided_slice %147 {offsets = [0, 0], sizes = [8, 64], strides = [1, 1]} : vector<8x256xf32> to vector<8x64xf32>
    %149 = arith.negf %148 : vector<8x64xf32>
    %150 = math.exp %149 : vector<8x64xf32>
    %cst_48 = arith.constant 1.000000e+00 : f32
    %151 = vector.broadcast %cst_48 : f32 to vector<8x64xf32>
    %152 = arith.addf %151, %150 : vector<8x64xf32>
    %153 = arith.divf %151, %152 : vector<8x64xf32>
    %154 = vector.extract_strided_slice %147 {offsets = [0, 64], sizes = [8, 64], strides = [1, 1]} : vector<8x256xf32> to vector<8x64xf32>
    %155 = arith.negf %154 : vector<8x64xf32>
    %156 = math.exp %155 : vector<8x64xf32>
    %cst_49 = arith.constant 1.000000e+00 : f32
    %157 = vector.broadcast %cst_49 : f32 to vector<8x64xf32>
    %158 = arith.addf %157, %156 : vector<8x64xf32>
    %159 = arith.divf %157, %158 : vector<8x64xf32>
    %160 = vector.extract_strided_slice %147 {offsets = [0, 128], sizes = [8, 64], strides = [1, 1]} : vector<8x256xf32> to vector<8x64xf32>
    %161 = math.tanh %160 : vector<8x64xf32>
    %162 = vector.extract_strided_slice %147 {offsets = [0, 192], sizes = [8, 64], strides = [1, 1]} : vector<8x256xf32> to vector<8x64xf32>
    %163 = arith.negf %162 : vector<8x64xf32>
    %164 = math.exp %163 : vector<8x64xf32>
    %cst_50 = arith.constant 1.000000e+00 : f32
    %165 = vector.broadcast %cst_50 : f32 to vector<8x64xf32>
    %166 = arith.addf %165, %164 : vector<8x64xf32>
    %167 = arith.divf %165, %166 : vector<8x64xf32>
    %168 = arith.mulf %159, %108 : vector<8x64xf32>
    %169 = arith.mulf %153, %161 : vector<8x64xf32>
    %170 = arith.addf %168, %169 : vector<8x64xf32>
    %171 = math.tanh %170 : vector<8x64xf32>
    %172 = arith.mulf %167, %171 : vector<8x64xf32>
    %173 = tpu.concatenate %172, %139 in 1 : vector<8x64xf32>, vector<8x64xf32> -> vector<8x128xf32>
    %cst_51 = arith.constant dense<0.000000e+00> : vector<8x256xf32>
    %174 = tpu.matmul %173, %8, %cst_51 {dimension_numbers = #tpu.dot_dimension_numbers<[1], [0], [0], [1], [0, 0, 1, 1], [], []>} : vector<8x128xf32>, vector<128x256xf32>, vector<8x256xf32> -> vector<8x256xf32>
    %175 = vector.broadcast %9 : vector<1x256xf32> to vector<8x256xf32>
    %176 = arith.addf %174, %175 : vector<8x256xf32>
    %177 = vector.extract_strided_slice %176 {offsets = [0, 0], sizes = [8, 64], strides = [1, 1]} : vector<8x256xf32> to vector<8x64xf32>
    %178 = arith.negf %177 : vector<8x64xf32>
    %179 = math.exp %178 : vector<8x64xf32>
    %cst_52 = arith.constant 1.000000e+00 : f32
    %180 = vector.broadcast %cst_52 : f32 to vector<8x64xf32>
    %181 = arith.addf %180, %179 : vector<8x64xf32>
    %182 = arith.divf %180, %181 : vector<8x64xf32>
    %183 = vector.extract_strided_slice %176 {offsets = [0, 64], sizes = [8, 64], strides = [1, 1]} : vector<8x256xf32> to vector<8x64xf32>
    %184 = arith.negf %183 : vector<8x64xf32>
    %185 = math.exp %184 : vector<8x64xf32>
    %cst_53 = arith.constant 1.000000e+00 : f32
    %186 = vector.broadcast %cst_53 : f32 to vector<8x64xf32>
    %187 = arith.addf %186, %185 : vector<8x64xf32>
    %188 = arith.divf %186, %187 : vector<8x64xf32>
    %189 = vector.extract_strided_slice %176 {offsets = [0, 128], sizes = [8, 64], strides = [1, 1]} : vector<8x256xf32> to vector<8x64xf32>
    %190 = math.tanh %189 : vector<8x64xf32>
    %191 = vector.extract_strided_slice %176 {offsets = [0, 192], sizes = [8, 64], strides = [1, 1]} : vector<8x256xf32> to vector<8x64xf32>
    %192 = arith.negf %191 : vector<8x64xf32>
    %193 = math.exp %192 : vector<8x64xf32>
    %cst_54 = arith.constant 1.000000e+00 : f32
    %194 = vector.broadcast %cst_54 : f32 to vector<8x64xf32>
    %195 = arith.addf %194, %193 : vector<8x64xf32>
    %196 = arith.divf %194, %195 : vector<8x64xf32>
    %197 = arith.mulf %188, %137 : vector<8x64xf32>
    %198 = arith.mulf %182, %190 : vector<8x64xf32>
    %199 = arith.addf %197, %198 : vector<8x64xf32>
    %200 = math.tanh %199 : vector<8x64xf32>
    %201 = arith.mulf %196, %200 : vector<8x64xf32>
    %202 = arith.index_cast %143 : i32 to index
    %c0_55 = arith.constant 0 : index
    %203 = vector.load %arg15[%202, %c0_55] : memref<64x64xf32, #tpu.memory_space<vmem>>, vector<8x64xf32>
    tpu.vector_store %arg15[%202, %c0_55], %201 {strides = array<i32>} : memref<64x64xf32, #tpu.memory_space<vmem>>, vector<8x64xf32>,
    %c3_i32 = arith.constant 3 : i32
    %c8_i32_56 = arith.constant 8 : i32
    %204 = arith.muli %c3_i32, %c8_i32_56 : i32
    %205 = tpu.assume_multiple %204, 8 : i32
    %206 = arith.index_cast %205 : i32 to index
    %c0_57 = arith.constant 0 : index
    %207 = vector.load %arg14[%206, %c0_57] : memref<64x256xf32, #tpu.memory_space<vmem>>, vector<8x256xf32>
    %cst_58 = arith.constant dense<0.000000e+00> : vector<8x256xf32>
    %208 = tpu.matmul %172, %7, %cst_58 {dimension_numbers = #tpu.dot_dimension_numbers<[1], [0], [0], [1], [0, 0, 1, 1], [], []>} : vector<8x64xf32>, vector<64x256xf32>, vector<8x256xf32> -> vector<8x256xf32>
    %209 = arith.addf %207, %208 : vector<8x256xf32>
    %210 = vector.extract_strided_slice %209 {offsets = [0, 0], sizes = [8, 64], strides = [1, 1]} : vector<8x256xf32> to vector<8x64xf32>
    %211 = arith.negf %210 : vector<8x64xf32>
    %212 = math.exp %211 : vector<8x64xf32>
    %cst_59 = arith.constant 1.000000e+00 : f32
    %213 = vector.broadcast %cst_59 : f32 to vector<8x64xf32>
    %214 = arith.addf %213, %212 : vector<8x64xf32>
    %215 = arith.divf %213, %214 : vector<8x64xf32>
    %216 = vector.extract_strided_slice %209 {offsets = [0, 64], sizes = [8, 64], strides = [1, 1]} : vector<8x256xf32> to vector<8x64xf32>
    %217 = arith.negf %216 : vector<8x64xf32>
    %218 = math.exp %217 : vector<8x64xf32>
    %cst_60 = arith.constant 1.000000e+00 : f32
    %219 = vector.broadcast %cst_60 : f32 to vector<8x64xf32>
    %220 = arith.addf %219, %218 : vector<8x64xf32>
    %221 = arith.divf %219, %220 : vector<8x64xf32>
    %222 = vector.extract_strided_slice %209 {offsets = [0, 128], sizes = [8, 64], strides = [1, 1]} : vector<8x256xf32> to vector<8x64xf32>
    %223 = math.tanh %222 : vector<8x64xf32>
    %224 = vector.extract_strided_slice %209 {offsets = [0, 192], sizes = [8, 64], strides = [1, 1]} : vector<8x256xf32> to vector<8x64xf32>
    %225 = arith.negf %224 : vector<8x64xf32>
    %226 = math.exp %225 : vector<8x64xf32>
    %cst_61 = arith.constant 1.000000e+00 : f32
    %227 = vector.broadcast %cst_61 : f32 to vector<8x64xf32>
    %228 = arith.addf %227, %226 : vector<8x64xf32>
    %229 = arith.divf %227, %228 : vector<8x64xf32>
    %230 = arith.mulf %221, %170 : vector<8x64xf32>
    %231 = arith.mulf %215, %223 : vector<8x64xf32>
    %232 = arith.addf %230, %231 : vector<8x64xf32>
    %233 = math.tanh %232 : vector<8x64xf32>
    %234 = arith.mulf %229, %233 : vector<8x64xf32>
    %235 = tpu.concatenate %234, %201 in 1 : vector<8x64xf32>, vector<8x64xf32> -> vector<8x128xf32>
    %cst_62 = arith.constant dense<0.000000e+00> : vector<8x256xf32>
    %236 = tpu.matmul %235, %8, %cst_62 {dimension_numbers = #tpu.dot_dimension_numbers<[1], [0], [0], [1], [0, 0, 1, 1], [], []>} : vector<8x128xf32>, vector<128x256xf32>, vector<8x256xf32> -> vector<8x256xf32>
    %237 = vector.broadcast %9 : vector<1x256xf32> to vector<8x256xf32>
    %238 = arith.addf %236, %237 : vector<8x256xf32>
    %239 = vector.extract_strided_slice %238 {offsets = [0, 0], sizes = [8, 64], strides = [1, 1]} : vector<8x256xf32> to vector<8x64xf32>
    %240 = arith.negf %239 : vector<8x64xf32>
    %241 = math.exp %240 : vector<8x64xf32>
    %cst_63 = arith.constant 1.000000e+00 : f32
    %242 = vector.broadcast %cst_63 : f32 to vector<8x64xf32>
    %243 = arith.addf %242, %241 : vector<8x64xf32>
    %244 = arith.divf %242, %243 : vector<8x64xf32>
    %245 = vector.extract_strided_slice %238 {offsets = [0, 64], sizes = [8, 64], strides = [1, 1]} : vector<8x256xf32> to vector<8x64xf32>
    %246 = arith.negf %245 : vector<8x64xf32>
    %247 = math.exp %246 : vector<8x64xf32>
    %cst_64 = arith.constant 1.000000e+00 : f32
    %248 = vector.broadcast %cst_64 : f32 to vector<8x64xf32>
    %249 = arith.addf %248, %247 : vector<8x64xf32>
    %250 = arith.divf %248, %249 : vector<8x64xf32>
    %251 = vector.extract_strided_slice %238 {offsets = [0, 128], sizes = [8, 64], strides = [1, 1]} : vector<8x256xf32> to vector<8x64xf32>
    %252 = math.tanh %251 : vector<8x64xf32>
    %253 = vector.extract_strided_slice %238 {offsets = [0, 192], sizes = [8, 64], strides = [1, 1]} : vector<8x256xf32> to vector<8x64xf32>
    %254 = arith.negf %253 : vector<8x64xf32>
    %255 = math.exp %254 : vector<8x64xf32>
    %cst_65 = arith.constant 1.000000e+00 : f32
    %256 = vector.broadcast %cst_65 : f32 to vector<8x64xf32>
    %257 = arith.addf %256, %255 : vector<8x64xf32>
    %258 = arith.divf %256, %257 : vector<8x64xf32>
    %259 = arith.mulf %250, %199 : vector<8x64xf32>
    %260 = arith.mulf %244, %252 : vector<8x64xf32>
    %261 = arith.addf %259, %260 : vector<8x64xf32>
    %262 = math.tanh %261 : vector<8x64xf32>
    %263 = arith.mulf %258, %262 : vector<8x64xf32>
    %264 = arith.index_cast %205 : i32 to index
    %c0_66 = arith.constant 0 : index
    %265 = vector.load %arg15[%264, %c0_66] : memref<64x64xf32, #tpu.memory_space<vmem>>, vector<8x64xf32>
    tpu.vector_store %arg15[%264, %c0_66], %263 {strides = array<i32>} : memref<64x64xf32, #tpu.memory_space<vmem>>, vector<8x64xf32>,
    %c4_i32 = arith.constant 4 : i32
    %c8_i32_67 = arith.constant 8 : i32
    %266 = arith.muli %c4_i32, %c8_i32_67 : i32
    %267 = tpu.assume_multiple %266, 8 : i32
    %268 = arith.index_cast %267 : i32 to index
    %c0_68 = arith.constant 0 : index
    %269 = vector.load %arg14[%268, %c0_68] : memref<64x256xf32, #tpu.memory_space<vmem>>, vector<8x256xf32>
    %cst_69 = arith.constant dense<0.000000e+00> : vector<8x256xf32>
    %270 = tpu.matmul %234, %7, %cst_69 {dimension_numbers = #tpu.dot_dimension_numbers<[1], [0], [0], [1], [0, 0, 1, 1], [], []>} : vector<8x64xf32>, vector<64x256xf32>, vector<8x256xf32> -> vector<8x256xf32>
    %271 = arith.addf %269, %270 : vector<8x256xf32>
    %272 = vector.extract_strided_slice %271 {offsets = [0, 0], sizes = [8, 64], strides = [1, 1]} : vector<8x256xf32> to vector<8x64xf32>
    %273 = arith.negf %272 : vector<8x64xf32>
    %274 = math.exp %273 : vector<8x64xf32>
    %cst_70 = arith.constant 1.000000e+00 : f32
    %275 = vector.broadcast %cst_70 : f32 to vector<8x64xf32>
    %276 = arith.addf %275, %274 : vector<8x64xf32>
    %277 = arith.divf %275, %276 : vector<8x64xf32>
    %278 = vector.extract_strided_slice %271 {offsets = [0, 64], sizes = [8, 64], strides = [1, 1]} : vector<8x256xf32> to vector<8x64xf32>
    %279 = arith.negf %278 : vector<8x64xf32>
    %280 = math.exp %279 : vector<8x64xf32>
    %cst_71 = arith.constant 1.000000e+00 : f32
    %281 = vector.broadcast %cst_71 : f32 to vector<8x64xf32>
    %282 = arith.addf %281, %280 : vector<8x64xf32>
    %283 = arith.divf %281, %282 : vector<8x64xf32>
    %284 = vector.extract_strided_slice %271 {offsets = [0, 128], sizes = [8, 64], strides = [1, 1]} : vector<8x256xf32> to vector<8x64xf32>
    %285 = math.tanh %284 : vector<8x64xf32>
    %286 = vector.extract_strided_slice %271 {offsets = [0, 192], sizes = [8, 64], strides = [1, 1]} : vector<8x256xf32> to vector<8x64xf32>
    %287 = arith.negf %286 : vector<8x64xf32>
    %288 = math.exp %287 : vector<8x64xf32>
    %cst_72 = arith.constant 1.000000e+00 : f32
    %289 = vector.broadcast %cst_72 : f32 to vector<8x64xf32>
    %290 = arith.addf %289, %288 : vector<8x64xf32>
    %291 = arith.divf %289, %290 : vector<8x64xf32>
    %292 = arith.mulf %283, %232 : vector<8x64xf32>
    %293 = arith.mulf %277, %285 : vector<8x64xf32>
    %294 = arith.addf %292, %293 : vector<8x64xf32>
    %295 = math.tanh %294 : vector<8x64xf32>
    %296 = arith.mulf %291, %295 : vector<8x64xf32>
    %297 = tpu.concatenate %296, %263 in 1 : vector<8x64xf32>, vector<8x64xf32> -> vector<8x128xf32>
    %cst_73 = arith.constant dense<0.000000e+00> : vector<8x256xf32>
    %298 = tpu.matmul %297, %8, %cst_73 {dimension_numbers = #tpu.dot_dimension_numbers<[1], [0], [0], [1], [0, 0, 1, 1], [], []>} : vector<8x128xf32>, vector<128x256xf32>, vector<8x256xf32> -> vector<8x256xf32>
    %299 = vector.broadcast %9 : vector<1x256xf32> to vector<8x256xf32>
    %300 = arith.addf %298, %299 : vector<8x256xf32>
    %301 = vector.extract_strided_slice %300 {offsets = [0, 0], sizes = [8, 64], strides = [1, 1]} : vector<8x256xf32> to vector<8x64xf32>
    %302 = arith.negf %301 : vector<8x64xf32>
    %303 = math.exp %302 : vector<8x64xf32>
    %cst_74 = arith.constant 1.000000e+00 : f32
    %304 = vector.broadcast %cst_74 : f32 to vector<8x64xf32>
    %305 = arith.addf %304, %303 : vector<8x64xf32>
    %306 = arith.divf %304, %305 : vector<8x64xf32>
    %307 = vector.extract_strided_slice %300 {offsets = [0, 64], sizes = [8, 64], strides = [1, 1]} : vector<8x256xf32> to vector<8x64xf32>
    %308 = arith.negf %307 : vector<8x64xf32>
    %309 = math.exp %308 : vector<8x64xf32>
    %cst_75 = arith.constant 1.000000e+00 : f32
    %310 = vector.broadcast %cst_75 : f32 to vector<8x64xf32>
    %311 = arith.addf %310, %309 : vector<8x64xf32>
    %312 = arith.divf %310, %311 : vector<8x64xf32>
    %313 = vector.extract_strided_slice %300 {offsets = [0, 128], sizes = [8, 64], strides = [1, 1]} : vector<8x256xf32> to vector<8x64xf32>
    %314 = math.tanh %313 : vector<8x64xf32>
    %315 = vector.extract_strided_slice %300 {offsets = [0, 192], sizes = [8, 64], strides = [1, 1]} : vector<8x256xf32> to vector<8x64xf32>
    %316 = arith.negf %315 : vector<8x64xf32>
    %317 = math.exp %316 : vector<8x64xf32>
    %cst_76 = arith.constant 1.000000e+00 : f32
    %318 = vector.broadcast %cst_76 : f32 to vector<8x64xf32>
    %319 = arith.addf %318, %317 : vector<8x64xf32>
    %320 = arith.divf %318, %319 : vector<8x64xf32>
    %321 = arith.mulf %312, %261 : vector<8x64xf32>
    %322 = arith.mulf %306, %314 : vector<8x64xf32>
    %323 = arith.addf %321, %322 : vector<8x64xf32>
    %324 = math.tanh %323 : vector<8x64xf32>
    %325 = arith.mulf %320, %324 : vector<8x64xf32>
    %326 = arith.index_cast %267 : i32 to index
    %c0_77 = arith.constant 0 : index
    %327 = vector.load %arg15[%326, %c0_77] : memref<64x64xf32, #tpu.memory_space<vmem>>, vector<8x64xf32>
    tpu.vector_store %arg15[%326, %c0_77], %325 {strides = array<i32>} : memref<64x64xf32, #tpu.memory_space<vmem>>, vector<8x64xf32>,
    %c5_i32 = arith.constant 5 : i32
    %c8_i32_78 = arith.constant 8 : i32
    %328 = arith.muli %c5_i32, %c8_i32_78 : i32
    %329 = tpu.assume_multiple %328, 8 : i32
    %330 = arith.index_cast %329 : i32 to index
    %c0_79 = arith.constant 0 : index
    %331 = vector.load %arg14[%330, %c0_79] : memref<64x256xf32, #tpu.memory_space<vmem>>, vector<8x256xf32>
    %cst_80 = arith.constant dense<0.000000e+00> : vector<8x256xf32>
    %332 = tpu.matmul %296, %7, %cst_80 {dimension_numbers = #tpu.dot_dimension_numbers<[1], [0], [0], [1], [0, 0, 1, 1], [], []>} : vector<8x64xf32>, vector<64x256xf32>, vector<8x256xf32> -> vector<8x256xf32>
    %333 = arith.addf %331, %332 : vector<8x256xf32>
    %334 = vector.extract_strided_slice %333 {offsets = [0, 0], sizes = [8, 64], strides = [1, 1]} : vector<8x256xf32> to vector<8x64xf32>
    %335 = arith.negf %334 : vector<8x64xf32>
    %336 = math.exp %335 : vector<8x64xf32>
    %cst_81 = arith.constant 1.000000e+00 : f32
    %337 = vector.broadcast %cst_81 : f32 to vector<8x64xf32>
    %338 = arith.addf %337, %336 : vector<8x64xf32>
    %339 = arith.divf %337, %338 : vector<8x64xf32>
    %340 = vector.extract_strided_slice %333 {offsets = [0, 64], sizes = [8, 64], strides = [1, 1]} : vector<8x256xf32> to vector<8x64xf32>
    %341 = arith.negf %340 : vector<8x64xf32>
    %342 = math.exp %341 : vector<8x64xf32>
    %cst_82 = arith.constant 1.000000e+00 : f32
    %343 = vector.broadcast %cst_82 : f32 to vector<8x64xf32>
    %344 = arith.addf %343, %342 : vector<8x64xf32>
    %345 = arith.divf %343, %344 : vector<8x64xf32>
    %346 = vector.extract_strided_slice %333 {offsets = [0, 128], sizes = [8, 64], strides = [1, 1]} : vector<8x256xf32> to vector<8x64xf32>
    %347 = math.tanh %346 : vector<8x64xf32>
    %348 = vector.extract_strided_slice %333 {offsets = [0, 192], sizes = [8, 64], strides = [1, 1]} : vector<8x256xf32> to vector<8x64xf32>
    %349 = arith.negf %348 : vector<8x64xf32>
    %350 = math.exp %349 : vector<8x64xf32>
    %cst_83 = arith.constant 1.000000e+00 : f32
    %351 = vector.broadcast %cst_83 : f32 to vector<8x64xf32>
    %352 = arith.addf %351, %350 : vector<8x64xf32>
    %353 = arith.divf %351, %352 : vector<8x64xf32>
    %354 = arith.mulf %345, %294 : vector<8x64xf32>
    %355 = arith.mulf %339, %347 : vector<8x64xf32>
    %356 = arith.addf %354, %355 : vector<8x64xf32>
    %357 = math.tanh %356 : vector<8x64xf32>
    %358 = arith.mulf %353, %357 : vector<8x64xf32>
    %359 = tpu.concatenate %358, %325 in 1 : vector<8x64xf32>, vector<8x64xf32> -> vector<8x128xf32>
    %cst_84 = arith.constant dense<0.000000e+00> : vector<8x256xf32>
    %360 = tpu.matmul %359, %8, %cst_84 {dimension_numbers = #tpu.dot_dimension_numbers<[1], [0], [0], [1], [0, 0, 1, 1], [], []>} : vector<8x128xf32>, vector<128x256xf32>, vector<8x256xf32> -> vector<8x256xf32>
    %361 = vector.broadcast %9 : vector<1x256xf32> to vector<8x256xf32>
    %362 = arith.addf %360, %361 : vector<8x256xf32>
    %363 = vector.extract_strided_slice %362 {offsets = [0, 0], sizes = [8, 64], strides = [1, 1]} : vector<8x256xf32> to vector<8x64xf32>
    %364 = arith.negf %363 : vector<8x64xf32>
    %365 = math.exp %364 : vector<8x64xf32>
    %cst_85 = arith.constant 1.000000e+00 : f32
    %366 = vector.broadcast %cst_85 : f32 to vector<8x64xf32>
    %367 = arith.addf %366, %365 : vector<8x64xf32>
    %368 = arith.divf %366, %367 : vector<8x64xf32>
    %369 = vector.extract_strided_slice %362 {offsets = [0, 64], sizes = [8, 64], strides = [1, 1]} : vector<8x256xf32> to vector<8x64xf32>
    %370 = arith.negf %369 : vector<8x64xf32>
    %371 = math.exp %370 : vector<8x64xf32>
    %cst_86 = arith.constant 1.000000e+00 : f32
    %372 = vector.broadcast %cst_86 : f32 to vector<8x64xf32>
    %373 = arith.addf %372, %371 : vector<8x64xf32>
    %374 = arith.divf %372, %373 : vector<8x64xf32>
    %375 = vector.extract_strided_slice %362 {offsets = [0, 128], sizes = [8, 64], strides = [1, 1]} : vector<8x256xf32> to vector<8x64xf32>
    %376 = math.tanh %375 : vector<8x64xf32>
    %377 = vector.extract_strided_slice %362 {offsets = [0, 192], sizes = [8, 64], strides = [1, 1]} : vector<8x256xf32> to vector<8x64xf32>
    %378 = arith.negf %377 : vector<8x64xf32>
    %379 = math.exp %378 : vector<8x64xf32>
    %cst_87 = arith.constant 1.000000e+00 : f32
    %380 = vector.broadcast %cst_87 : f32 to vector<8x64xf32>
    %381 = arith.addf %380, %379 : vector<8x64xf32>
    %382 = arith.divf %380, %381 : vector<8x64xf32>
    %383 = arith.mulf %374, %323 : vector<8x64xf32>
    %384 = arith.mulf %368, %376 : vector<8x64xf32>
    %385 = arith.addf %383, %384 : vector<8x64xf32>
    %386 = math.tanh %385 : vector<8x64xf32>
    %387 = arith.mulf %382, %386 : vector<8x64xf32>
    %388 = arith.index_cast %329 : i32 to index
    %c0_88 = arith.constant 0 : index
    %389 = vector.load %arg15[%388, %c0_88] : memref<64x64xf32, #tpu.memory_space<vmem>>, vector<8x64xf32>
    tpu.vector_store %arg15[%388, %c0_88], %387 {strides = array<i32>} : memref<64x64xf32, #tpu.memory_space<vmem>>, vector<8x64xf32>,
    %c6_i32 = arith.constant 6 : i32
    %c8_i32_89 = arith.constant 8 : i32
    %390 = arith.muli %c6_i32, %c8_i32_89 : i32
    %391 = tpu.assume_multiple %390, 8 : i32
    %392 = arith.index_cast %391 : i32 to index
    %c0_90 = arith.constant 0 : index
    %393 = vector.load %arg14[%392, %c0_90] : memref<64x256xf32, #tpu.memory_space<vmem>>, vector<8x256xf32>
    %cst_91 = arith.constant dense<0.000000e+00> : vector<8x256xf32>
    %394 = tpu.matmul %358, %7, %cst_91 {dimension_numbers = #tpu.dot_dimension_numbers<[1], [0], [0], [1], [0, 0, 1, 1], [], []>} : vector<8x64xf32>, vector<64x256xf32>, vector<8x256xf32> -> vector<8x256xf32>
    %395 = arith.addf %393, %394 : vector<8x256xf32>
    %396 = vector.extract_strided_slice %395 {offsets = [0, 0], sizes = [8, 64], strides = [1, 1]} : vector<8x256xf32> to vector<8x64xf32>
    %397 = arith.negf %396 : vector<8x64xf32>
    %398 = math.exp %397 : vector<8x64xf32>
    %cst_92 = arith.constant 1.000000e+00 : f32
    %399 = vector.broadcast %cst_92 : f32 to vector<8x64xf32>
    %400 = arith.addf %399, %398 : vector<8x64xf32>
    %401 = arith.divf %399, %400 : vector<8x64xf32>
    %402 = vector.extract_strided_slice %395 {offsets = [0, 64], sizes = [8, 64], strides = [1, 1]} : vector<8x256xf32> to vector<8x64xf32>
    %403 = arith.negf %402 : vector<8x64xf32>
    %404 = math.exp %403 : vector<8x64xf32>
    %cst_93 = arith.constant 1.000000e+00 : f32
    %405 = vector.broadcast %cst_93 : f32 to vector<8x64xf32>
    %406 = arith.addf %405, %404 : vector<8x64xf32>
    %407 = arith.divf %405, %406 : vector<8x64xf32>
    %408 = vector.extract_strided_slice %395 {offsets = [0, 128], sizes = [8, 64], strides = [1, 1]} : vector<8x256xf32> to vector<8x64xf32>
    %409 = math.tanh %408 : vector<8x64xf32>
    %410 = vector.extract_strided_slice %395 {offsets = [0, 192], sizes = [8, 64], strides = [1, 1]} : vector<8x256xf32> to vector<8x64xf32>
    %411 = arith.negf %410 : vector<8x64xf32>
    %412 = math.exp %411 : vector<8x64xf32>
    %cst_94 = arith.constant 1.000000e+00 : f32
    %413 = vector.broadcast %cst_94 : f32 to vector<8x64xf32>
    %414 = arith.addf %413, %412 : vector<8x64xf32>
    %415 = arith.divf %413, %414 : vector<8x64xf32>
    %416 = arith.mulf %407, %356 : vector<8x64xf32>
    %417 = arith.mulf %401, %409 : vector<8x64xf32>
    %418 = arith.addf %416, %417 : vector<8x64xf32>
    %419 = math.tanh %418 : vector<8x64xf32>
    %420 = arith.mulf %415, %419 : vector<8x64xf32>
    %421 = tpu.concatenate %420, %387 in 1 : vector<8x64xf32>, vector<8x64xf32> -> vector<8x128xf32>
    %cst_95 = arith.constant dense<0.000000e+00> : vector<8x256xf32>
    %422 = tpu.matmul %421, %8, %cst_95 {dimension_numbers = #tpu.dot_dimension_numbers<[1], [0], [0], [1], [0, 0, 1, 1], [], []>} : vector<8x128xf32>, vector<128x256xf32>, vector<8x256xf32> -> vector<8x256xf32>
    %423 = vector.broadcast %9 : vector<1x256xf32> to vector<8x256xf32>
    %424 = arith.addf %422, %423 : vector<8x256xf32>
    %425 = vector.extract_strided_slice %424 {offsets = [0, 0], sizes = [8, 64], strides = [1, 1]} : vector<8x256xf32> to vector<8x64xf32>
    %426 = arith.negf %425 : vector<8x64xf32>
    %427 = math.exp %426 : vector<8x64xf32>
    %cst_96 = arith.constant 1.000000e+00 : f32
    %428 = vector.broadcast %cst_96 : f32 to vector<8x64xf32>
    %429 = arith.addf %428, %427 : vector<8x64xf32>
    %430 = arith.divf %428, %429 : vector<8x64xf32>
    %431 = vector.extract_strided_slice %424 {offsets = [0, 64], sizes = [8, 64], strides = [1, 1]} : vector<8x256xf32> to vector<8x64xf32>
    %432 = arith.negf %431 : vector<8x64xf32>
    %433 = math.exp %432 : vector<8x64xf32>
    %cst_97 = arith.constant 1.000000e+00 : f32
    %434 = vector.broadcast %cst_97 : f32 to vector<8x64xf32>
    %435 = arith.addf %434, %433 : vector<8x64xf32>
    %436 = arith.divf %434, %435 : vector<8x64xf32>
    %437 = vector.extract_strided_slice %424 {offsets = [0, 128], sizes = [8, 64], strides = [1, 1]} : vector<8x256xf32> to vector<8x64xf32>
    %438 = math.tanh %437 : vector<8x64xf32>
    %439 = vector.extract_strided_slice %424 {offsets = [0, 192], sizes = [8, 64], strides = [1, 1]} : vector<8x256xf32> to vector<8x64xf32>
    %440 = arith.negf %439 : vector<8x64xf32>
    %441 = math.exp %440 : vector<8x64xf32>
    %cst_98 = arith.constant 1.000000e+00 : f32
    %442 = vector.broadcast %cst_98 : f32 to vector<8x64xf32>
    %443 = arith.addf %442, %441 : vector<8x64xf32>
    %444 = arith.divf %442, %443 : vector<8x64xf32>
    %445 = arith.mulf %436, %385 : vector<8x64xf32>
    %446 = arith.mulf %430, %438 : vector<8x64xf32>
    %447 = arith.addf %445, %446 : vector<8x64xf32>
    %448 = math.tanh %447 : vector<8x64xf32>
    %449 = arith.mulf %444, %448 : vector<8x64xf32>
    %450 = arith.index_cast %391 : i32 to index
    %c0_99 = arith.constant 0 : index
    %451 = vector.load %arg15[%450, %c0_99] : memref<64x64xf32, #tpu.memory_space<vmem>>, vector<8x64xf32>
    tpu.vector_store %arg15[%450, %c0_99], %449 {strides = array<i32>} : memref<64x64xf32, #tpu.memory_space<vmem>>, vector<8x64xf32>,
    %c7_i32 = arith.constant 7 : i32
    %c8_i32_100 = arith.constant 8 : i32
    %452 = arith.muli %c7_i32, %c8_i32_100 : i32
    %453 = tpu.assume_multiple %452, 8 : i32
    %454 = arith.index_cast %453 : i32 to index
    %c0_101 = arith.constant 0 : index
    %455 = vector.load %arg14[%454, %c0_101] : memref<64x256xf32, #tpu.memory_space<vmem>>, vector<8x256xf32>
    %cst_102 = arith.constant dense<0.000000e+00> : vector<8x256xf32>
    %456 = tpu.matmul %420, %7, %cst_102 {dimension_numbers = #tpu.dot_dimension_numbers<[1], [0], [0], [1], [0, 0, 1, 1], [], []>} : vector<8x64xf32>, vector<64x256xf32>, vector<8x256xf32> -> vector<8x256xf32>
    %457 = arith.addf %455, %456 : vector<8x256xf32>
    %458 = vector.extract_strided_slice %457 {offsets = [0, 0], sizes = [8, 64], strides = [1, 1]} : vector<8x256xf32> to vector<8x64xf32>
    %459 = arith.negf %458 : vector<8x64xf32>
    %460 = math.exp %459 : vector<8x64xf32>
    %cst_103 = arith.constant 1.000000e+00 : f32
    %461 = vector.broadcast %cst_103 : f32 to vector<8x64xf32>
    %462 = arith.addf %461, %460 : vector<8x64xf32>
    %463 = arith.divf %461, %462 : vector<8x64xf32>
    %464 = vector.extract_strided_slice %457 {offsets = [0, 64], sizes = [8, 64], strides = [1, 1]} : vector<8x256xf32> to vector<8x64xf32>
    %465 = arith.negf %464 : vector<8x64xf32>
    %466 = math.exp %465 : vector<8x64xf32>
    %cst_104 = arith.constant 1.000000e+00 : f32
    %467 = vector.broadcast %cst_104 : f32 to vector<8x64xf32>
    %468 = arith.addf %467, %466 : vector<8x64xf32>
    %469 = arith.divf %467, %468 : vector<8x64xf32>
    %470 = vector.extract_strided_slice %457 {offsets = [0, 128], sizes = [8, 64], strides = [1, 1]} : vector<8x256xf32> to vector<8x64xf32>
    %471 = math.tanh %470 : vector<8x64xf32>
    %472 = vector.extract_strided_slice %457 {offsets = [0, 192], sizes = [8, 64], strides = [1, 1]} : vector<8x256xf32> to vector<8x64xf32>
    %473 = arith.negf %472 : vector<8x64xf32>
    %474 = math.exp %473 : vector<8x64xf32>
    %cst_105 = arith.constant 1.000000e+00 : f32
    %475 = vector.broadcast %cst_105 : f32 to vector<8x64xf32>
    %476 = arith.addf %475, %474 : vector<8x64xf32>
    %477 = arith.divf %475, %476 : vector<8x64xf32>
    %478 = arith.mulf %469, %418 : vector<8x64xf32>
    %479 = arith.mulf %463, %471 : vector<8x64xf32>
    %480 = arith.addf %478, %479 : vector<8x64xf32>
    %481 = math.tanh %480 : vector<8x64xf32>
    %482 = arith.mulf %477, %481 : vector<8x64xf32>
    %483 = tpu.concatenate %482, %449 in 1 : vector<8x64xf32>, vector<8x64xf32> -> vector<8x128xf32>
    %cst_106 = arith.constant dense<0.000000e+00> : vector<8x256xf32>
    %484 = tpu.matmul %483, %8, %cst_106 {dimension_numbers = #tpu.dot_dimension_numbers<[1], [0], [0], [1], [0, 0, 1, 1], [], []>} : vector<8x128xf32>, vector<128x256xf32>, vector<8x256xf32> -> vector<8x256xf32>
    %485 = vector.broadcast %9 : vector<1x256xf32> to vector<8x256xf32>
    %486 = arith.addf %484, %485 : vector<8x256xf32>
    %487 = vector.extract_strided_slice %486 {offsets = [0, 0], sizes = [8, 64], strides = [1, 1]} : vector<8x256xf32> to vector<8x64xf32>
    %488 = arith.negf %487 : vector<8x64xf32>
    %489 = math.exp %488 : vector<8x64xf32>
    %cst_107 = arith.constant 1.000000e+00 : f32
    %490 = vector.broadcast %cst_107 : f32 to vector<8x64xf32>
    %491 = arith.addf %490, %489 : vector<8x64xf32>
    %492 = arith.divf %490, %491 : vector<8x64xf32>
    %493 = vector.extract_strided_slice %486 {offsets = [0, 64], sizes = [8, 64], strides = [1, 1]} : vector<8x256xf32> to vector<8x64xf32>
    %494 = arith.negf %493 : vector<8x64xf32>
    %495 = math.exp %494 : vector<8x64xf32>
    %cst_108 = arith.constant 1.000000e+00 : f32
    %496 = vector.broadcast %cst_108 : f32 to vector<8x64xf32>
    %497 = arith.addf %496, %495 : vector<8x64xf32>
    %498 = arith.divf %496, %497 : vector<8x64xf32>
    %499 = vector.extract_strided_slice %486 {offsets = [0, 128], sizes = [8, 64], strides = [1, 1]} : vector<8x256xf32> to vector<8x64xf32>
    %500 = math.tanh %499 : vector<8x64xf32>
    %501 = vector.extract_strided_slice %486 {offsets = [0, 192], sizes = [8, 64], strides = [1, 1]} : vector<8x256xf32> to vector<8x64xf32>
    %502 = arith.negf %501 : vector<8x64xf32>
    %503 = math.exp %502 : vector<8x64xf32>
    %cst_109 = arith.constant 1.000000e+00 : f32
    %504 = vector.broadcast %cst_109 : f32 to vector<8x64xf32>
    %505 = arith.addf %504, %503 : vector<8x64xf32>
    %506 = arith.divf %504, %505 : vector<8x64xf32>
    %507 = arith.mulf %498, %447 : vector<8x64xf32>
    %508 = arith.mulf %492, %500 : vector<8x64xf32>
    %509 = arith.addf %507, %508 : vector<8x64xf32>
    %510 = math.tanh %509 : vector<8x64xf32>
    %511 = arith.mulf %506, %510 : vector<8x64xf32>
    %512 = arith.index_cast %453 : i32 to index
    %c0_110 = arith.constant 0 : index
    %513 = vector.load %arg15[%512, %c0_110] : memref<64x64xf32, #tpu.memory_space<vmem>>, vector<8x64xf32>
    tpu.vector_store %arg15[%512, %c0_110], %511 {strides = array<i32>} : memref<64x64xf32, #tpu.memory_space<vmem>>, vector<8x64xf32>,
    %c8_i32_111 = arith.constant 8 : i32
    %c0_112 = arith.constant 0 : index
    %c0_113 = arith.constant 0 : index
    %c0_114 = arith.constant 0 : index
    %514 = vector.load %arg12[%c0_112, %c0_113, %c0_114] : memref<2x8x64xf32, #tpu.memory_space<vmem>>, vector<1x8x64xf32>
    %515 = vector.shape_cast %514 : vector<1x8x64xf32> to vector<8x64xf32>
    %516 = vector.shape_cast %482 : vector<8x64xf32> to vector<1x8x64xf32>
    tpu.vector_store %arg12[%c0_112, %c0_113, %c0_114], %516 {strides = array<i32>} : memref<2x8x64xf32, #tpu.memory_space<vmem>>, vector<1x8x64xf32>,
    %c1_115 = arith.constant 1 : index
    %c0_116 = arith.constant 0 : index
    %c0_117 = arith.constant 0 : index
    %517 = vector.load %arg12[%c1_115, %c0_116, %c0_117] : memref<2x8x64xf32, #tpu.memory_space<vmem>>, vector<1x8x64xf32>
    %518 = vector.shape_cast %517 : vector<1x8x64xf32> to vector<8x64xf32>
    %519 = vector.shape_cast %511 : vector<8x64xf32> to vector<1x8x64xf32>
    tpu.vector_store %arg12[%c1_115, %c0_116, %c0_117], %519 {strides = array<i32>} : memref<2x8x64xf32, #tpu.memory_space<vmem>>, vector<1x8x64xf32>,
    %c0_118 = arith.constant 0 : index
    %c0_119 = arith.constant 0 : index
    %c0_120 = arith.constant 0 : index
    %520 = vector.load %arg13[%c0_118, %c0_119, %c0_120] : memref<2x8x64xf32, #tpu.memory_space<vmem>>, vector<1x8x64xf32>
    %521 = vector.shape_cast %520 : vector<1x8x64xf32> to vector<8x64xf32>
    %522 = vector.shape_cast %480 : vector<8x64xf32> to vector<1x8x64xf32>
    tpu.vector_store %arg13[%c0_118, %c0_119, %c0_120], %522 {strides = array<i32>} : memref<2x8x64xf32, #tpu.memory_space<vmem>>, vector<1x8x64xf32>,
    %c1_121 = arith.constant 1 : index
    %c0_122 = arith.constant 0 : index
    %c0_123 = arith.constant 0 : index
    %523 = vector.load %arg13[%c1_121, %c0_122, %c0_123] : memref<2x8x64xf32, #tpu.memory_space<vmem>>, vector<1x8x64xf32>
    %524 = vector.shape_cast %523 : vector<1x8x64xf32> to vector<8x64xf32>
    %525 = vector.shape_cast %509 : vector<8x64xf32> to vector<1x8x64xf32>
    tpu.vector_store %arg13[%c1_121, %c0_122, %c0_123], %525 {strides = array<i32>} : memref<2x8x64xf32, #tpu.memory_space<vmem>>, vector<1x8x64xf32>,
    %c0_124 = arith.constant 0 : index
    %c0_125 = arith.constant 0 : index
    %526 = vector.load %arg15[%c0_124, %c0_125] : memref<64x64xf32, #tpu.memory_space<vmem>>, vector<64x64xf32>
    %c0_126 = arith.constant 0 : index
    %c0_127 = arith.constant 0 : index
    %527 = vector.load %arg9[%c0_126, %c0_127] : memref<64x2xf32, #tpu.memory_space<vmem>>, vector<64x2xf32>
    %cst_128 = arith.constant dense<0.000000e+00> : vector<64x2xf32>
    %528 = tpu.matmul %526, %527, %cst_128 {dimension_numbers = #tpu.dot_dimension_numbers<[1], [0], [0], [1], [0, 0, 1, 1], [], []>} : vector<64x64xf32>, vector<64x2xf32>, vector<64x2xf32> -> vector<64x2xf32>
    %c0_129 = arith.constant 0 : index
    %c0_130 = arith.constant 0 : index
    %529 = vector.load %arg10[%c0_129, %c0_130] : memref<1x2xf32, #tpu.memory_space<vmem>>, vector<1x2xf32>
    %530 = vector.broadcast %529 : vector<1x2xf32> to vector<64x2xf32>
    %531 = arith.addf %528, %530 : vector<64x2xf32>
    %532 = tpu.iota {dimensions = array<i32: 1>} : vector<64x2xi32>
    %c0_i32_131 = arith.constant 0 : i32
    %533 = vector.broadcast %c0_i32_131 : i32 to vector<64x2xi32>
    %534 = arith.cmpi eq, %532, %533 : vector<64x2xi32>
    %cst_132 = arith.constant 0.000000e+00 : f32
    %cst_133 = arith.constant -3.000000e+00 : f32
    %535 = vector.broadcast %cst_132 : f32 to vector<64x2xf32>
    %536 = vector.broadcast %cst_133 : f32 to vector<64x2xf32>
    %537 = arith.select %534, %535, %536 : vector<64x2xi1>, vector<64x2xf32>
    %c0_i32_134 = arith.constant 0 : i32
    %538 = vector.broadcast %c0_i32_134 : i32 to vector<64x2xi32>
    %539 = arith.cmpi eq, %532, %538 : vector<64x2xi32>
    %cst_135 = arith.constant 2.000000e+00 : f32
    %cst_136 = arith.constant 3.000000e+00 : f32
    %540 = vector.broadcast %cst_135 : f32 to vector<64x2xf32>
    %541 = vector.broadcast %cst_136 : f32 to vector<64x2xf32>
    %542 = arith.select %539, %540, %541 : vector<64x2xi1>, vector<64x2xf32>
    %543 = arith.subf %542, %537 : vector<64x2xf32>
    %544 = math.tanh %531 : vector<64x2xf32>
    %cst_137 = arith.constant 1.000000e+00 : f32
    %545 = vector.broadcast %cst_137 : f32 to vector<64x2xf32>
    %546 = arith.addf %544, %545 : vector<64x2xf32>
    %547 = arith.mulf %543, %546 : vector<64x2xf32>
    %cst_138 = arith.constant 5.000000e-01 : f32
    %548 = vector.broadcast %cst_138 : f32 to vector<64x2xf32>
    %549 = arith.mulf %547, %548 : vector<64x2xf32>
    %550 = arith.addf %537, %549 : vector<64x2xf32>
    %c0_139 = arith.constant 0 : index
    %c0_140 = arith.constant 0 : index
    %551 = vector.load %arg11[%c0_139, %c0_140] : memref<64x2xf32, #tpu.memory_space<vmem>>, vector<64x2xf32>
    tpu.vector_store %arg11[%c0_139, %c0_140], %550 {strides = array<i32>} : memref<64x2xf32, #tpu.memory_space<vmem>>, vector<64x2xf32>,
    return
  }
  func.func @transform_0(%arg0: i32) -> (i32, i32) {
    %c0_i32 = arith.constant 0 : i32
    %c0_i32_0 = arith.constant 0 : i32
    %c0_i32_1 = arith.constant 0 : i32
    return %c0_i32, %c0_i32_0 : i32, i32
  }
  func.func @transform_1(%arg0: i32) -> (i32, i32, i32) {
    %c0_i32 = arith.constant 0 : i32
    %c0_i32_0 = arith.constant 0 : i32
    %c0_i32_1 = arith.constant 0 : i32
    %c0_i32_2 = arith.constant 0 : i32
    return %c0_i32, %c0_i32_0, %c0_i32_1 : i32, i32, i32
  }
  func.func @transform_2(%arg0: i32) -> (i32, i32, i32) {
    %c0_i32 = arith.constant 0 : i32
    %c0_i32_0 = arith.constant 0 : i32
    %c0_i32_1 = arith.constant 0 : i32
    %c0_i32_2 = arith.constant 0 : i32
    return %c0_i32, %c0_i32_0, %c0_i32_1 : i32, i32, i32
  }
  func.func @transform_3(%arg0: i32) -> (i32, i32) {
    %c0_i32 = arith.constant 0 : i32
    %c0_i32_0 = arith.constant 0 : i32
    %c0_i32_1 = arith.constant 0 : i32
    return %c0_i32, %c0_i32_0 : i32, i32
  }
  func.func @transform_4(%arg0: i32) -> (i32, i32) {
    %c0_i32 = arith.constant 0 : i32
    %c0_i32_0 = arith.constant 0 : i32
    %c0_i32_1 = arith.constant 0 : i32
    return %c0_i32, %c0_i32_0 : i32, i32
  }
  func.func @transform_5(%arg0: i32) -> (i32, i32) {
    %c0_i32 = arith.constant 0 : i32
    %c0_i32_0 = arith.constant 0 : i32
    %c0_i32_1 = arith.constant 0 : i32
    return %c0_i32, %c0_i32_0 : i32, i32
  }
  func.func @transform_6(%arg0: i32) -> (i32, i32) {
    %c0_i32 = arith.constant 0 : i32
    %c0_i32_0 = arith.constant 0 : i32
    %c0_i32_1 = arith.constant 0 : i32
    return %c0_i32, %c0_i32_0 : i32, i32
  }
  func.func @transform_7(%arg0: i32) -> (i32, i32) {
    %c0_i32 = arith.constant 0 : i32
    %c0_i32_0 = arith.constant 0 : i32
    %c0_i32_1 = arith.constant 0 : i32
    return %c0_i32, %c0_i32_0 : i32, i32
  }
  func.func @transform_8(%arg0: i32) -> (i32, i32) {
    %c0_i32 = arith.constant 0 : i32
    %c0_i32_0 = arith.constant 0 : i32
    %c0_i32_1 = arith.constant 0 : i32
    return %c0_i32, %c0_i32_0 : i32, i32
  }
  func.func @transform_9(%arg0: i32) -> (i32, i32) {
    %c0_i32 = arith.constant 0 : i32
    %c0_i32_0 = arith.constant 0 : i32
    %c0_i32_1 = arith.constant 0 : i32
    return %c0_i32, %c0_i32_0 : i32, i32
  }
  func.func @transform_10(%arg0: i32) -> (i32, i32) {
    %c0_i32 = arith.constant 0 : i32
    %c0_i32_0 = arith.constant 0 : i32
    %c0_i32_1 = arith.constant 0 : i32
    return %c0_i32, %c0_i32_0 : i32, i32
  }
  func.func @transform_11(%arg0: i32) -> (i32, i32, i32) {
    %c0_i32 = arith.constant 0 : i32
    %c0_i32_0 = arith.constant 0 : i32
    %c0_i32_1 = arith.constant 0 : i32
    %c0_i32_2 = arith.constant 0 : i32
    return %c0_i32, %c0_i32_0, %c0_i32_1 : i32, i32, i32
  }
  func.func @transform_12(%arg0: i32) -> (i32, i32, i32) {
    %c0_i32 = arith.constant 0 : i32
    %c0_i32_0 = arith.constant 0 : i32
    %c0_i32_1 = arith.constant 0 : i32
    %c0_i32_2 = arith.constant 0 : i32
    return %c0_i32, %c0_i32_0, %c0_i32_1 : i32, i32, i32
  }
}

</mosaic_0001>

<bundles_post_ra>
// kernel: rnn_forward.1
= control target key start
LH: loop header
LB: loop body
LE: loop exit
PB: predicated region body
PF: predicated region fallthrough
CT: control target
= control target key end

     0   :  { %18 = vsyncpa [#allocation5], 0  ;;  %s2981_s21 = smov [#allocation4]   ;;  %s3726_s0 = inlined_call_operand.vmem [shape: f32[64,3], index: 0, kind: input, shape index: {}]   ;;  %s3727_s1 = inlined_call_operand.vmem [shape: f32[2,8,64], index: 1, kind: input, shape index: {}]   ;;  %s3728_s2 = inlined_call_operand.vmem [shape: f32[2,8,64], index: 2, kind: input, shape index: {}]   ;;  %s3729_s3 = inlined_call_operand.vmem [shape: f32[3,256], index: 3, kind: input, shape index: {}]   ;;  %s3730_s4 = inlined_call_operand.vmem [shape: f32[64,256], index: 4, kind: input, shape index: {}]   ;;  %s3731_s5 = inlined_call_operand.vmem [shape: f32[1,256], index: 5, kind: input, shape index: {}]   ;;  %s3732_s6 = inlined_call_operand.hbm [shape: f32[128,256], index: 6, kind: input, shape index: {}]   ;;  %s3733_s7 = inlined_call_operand.vmem [shape: f32[1,256], index: 7, kind: input, shape index: {}]   ;;  %s3734_s8 = inlined_call_operand.vmem [shape: f32[64,2], index: 8, kind: input, shape index: {}]   ;;  %s3735_s9 = inlined_call_operand.vmem [shape: f32[1,2], index: 9, kind: input, shape index: {}]   ;;  %s3736_s10 = inlined_call_operand.vmem [shape: f32[64,2], index: 10, kind: output, shape index: {0}]   ;;  %s3737_s11 = inlined_call_operand.vmem [shape: f32[2,8,64], index: 11, kind: output, shape index: {1}]   ;;  %s3738_s12 = inlined_call_operand.vmem [shape: f32[2,8,64], index: 12, kind: output, shape index: {2}]  }
   0x1   :  { %s36_s22 = sshll.u32 %s2981_s21, 4  ;;  %s2957_s25 = scalar_lea.hbm %s3732_s6, 4096  ;;  %s37_s22 = int_to_ptr.vmem [resolvable:$true] %s36_s22 }
   0x2   :  { %p2958_p0 = scmp.ne.s32.totalorder %s3732_s6, %s2957_s25  ;;  %p2961_p1 = scmp.lt.u32.totalorder %s2957_s25, %s3732_s6 }
   0x4   :  { %p2963_p2 = pnand %p2961_p1, %p2958_p0 }
   0x6   :  { %2966 = shalt.err (!%p2963_p2)
}
   0x7   :  { %s2967_s30 = scalar_lea.vmem %s37_s22, 4096  ;;  %p2972_p4 = scmp.lt.s32.totalorder %s37_s22, %s37_s22 }
   0x8   :  { %p2968_p3 = scmp.ne.s32.totalorder %s37_s22, %s2967_s30  ;;  %p2973_p5 = scmp.lt.s32.totalorder %s2967_s30, %s2967_s30 }
   0xa   :  { %p2974_p6 = por %p2973_p5, %p2972_p4 }
   0xc   :  { %p2975_p7 = pnand %p2974_p6, %p2968_p3 }
   0xe   :  { %2978 = shalt.err (!%p2975_p7)
}
   0xf   :  { %s2982_s13 = smov 256   ;;  %s2983_s14 = smov 16  }
  0x10   :  { %42 = dma.hbm_to_vmem [thread:$0]  %s3732_s6, 4096, %s37_s22, [#allocation5], %s2982_s13, %s2982_s13, %s2983_s14  }
  0x11   :  { %2979 = dma.done.wait [#allocation5], 4096  }
  0x12   :  { %2980 = vsyncadd [#allocation5], 4294963200  ;;  %v2984_v0 = vmov 0.0   ;;  %v60_v1 = vld [vmem:[%s3729_s3] sm:$0x77]  ;;  %vm100_vm0 = vcmask 1042432   ;;  %v63_v37 = vlaneseq }
  0x13   :  { %169 = vmatprep.mubr.f32.mxu0 %v2984_v0  ;;  %481 = vmatprep.mubr.f32.mxu1 %v2984_v0  ;;  %v235_v2 = vld [vmem:[%s3730_s4 + $0x8] sm:$0xff]  ;;  %v74_v3 = vcombine.high %v60_v1, %v60_v1  ;;  %v237_v4 = vld [vmem:[%s3730_s4 + $0x18] sm:$0xff]  ;;  %v234_v5 = vld [vmem:[%s3730_s4] sm:$0xff]  ;;  %vm75_vm1 = vcmask 23552   ;;  %s2985_s13 = smov 64   ;;  %vm294_vm2 = vcmask 523264  }
  0x14   :  { %v236_v6 = vld [vmem:[%s3730_s4 + $0x10] sm:$0xff]  ;;  %v52_v7 = vld [vmem:[%s3726_s0] sm:$0xff]  ;;  %v3085_v8 = vpack.c.bf16 %v237_v4, %v235_v2  ;;  %v239_v10 = vld [vmem:[%s3730_s4 + $0x28] sm:$0xff]  ;;  %v3201_v38 = vshrl.u32 %v63_v37, 7  ;;  %vm2173_vm4 = vcmask 15360  }
  0x15   :  { %v3087_v9 = vpack.c.bf16 %v236_v6, %v234_v5  ;;  %2202 = vmatprep.subr.msk.mxu0 %vm100_vm0, %v74_v3  ;;  %v241_v11 = vld [vmem:[%s3730_s4 + $0x38] sm:$0xff]  ;;  %v238_v12 = vld [vmem:[%s3730_s4 + $0x20] sm:$0xff]  ;;  %v240_v13 = vld [vmem:[%s3730_s4 + $0x30] sm:$0xff] }
  0x16   :  { %2203 = vmatpush1.msk.msra.mxu0 %vm100_vm0, %v60_v1  ;;  %v3101_v14 = vpack.c.bf16 %v241_v11, %v239_v10  ;;  %v243_v15 = vld [vmem:[%s3730_s4 + $0x48] sm:$0xff]  ;;  %v245_v16 = vld [vmem:[%s3730_s4 + $0x58] sm:$0xff]  ;;  %v3116_v18 = vpack.c.bf16 %v240_v13, %v238_v12  ;;  %v242_v20 = vld [vmem:[%s3730_s4 + $0x40] sm:$0xff]  ;;  %v65_v39 = vsub.s32 0, %v3201_v38  ;;  %v69_v46 = vsub.s32 1, %v3201_v38 }
  0x17   :  { %2204 = vmatmul.mubr.msk.f32.vlgmr.msra.gmra.mrb[0].mxu0 %vm75_vm1, %v52_v7  ;;  %2310 = vmatprep.subr.bf16.mxu0 %v3085_v8  ;;  %v53_v17 = vld [vmem:[%s3726_s0 + $0x8] sm:$0xff]  ;;  %v3119_v19 = vpack.c.bf16 %v245_v16, %v243_v15  ;;  %v244_v21 = vld [vmem:[%s3730_s4 + $0x50] sm:$0xff]  ;;  %v249_v23 = vld [vmem:[%s3730_s4 + $0x78] sm:$0xff] }
  0x18   :  { %2312 = vmatpush1.bf16.msra.mxu0 %v3087_v9  ;;  %175 = vmatprep.mubr.f32.mxu0 %v2984_v0  ;;  %v247_v22 = vld [vmem:[%s3730_s4 + $0x68] sm:$0xff]  ;;  %v284_v24 = vld [vmem:[%s3728_s2] sm:$0xff]  ;;  %v54_v25 = vld [vmem:[%s3726_s0 + $0x10] sm:$0xff]  ;;  %v3143_v26 = vpack.c.bf16 %v244_v21, %v242_v20 }
  0x19   :  { %2314 = vmatprep.subr.bf16.mxu0 %v3101_v14  ;;  %385 = vrot.lane.b32.xlu0 %v284_v24, %s2985_s13  ;;  %v3146_v27 = vpack.c.bf16 %v249_v23, %v247_v22  ;;  %v246_v28 = vld [vmem:[%s3730_s4 + $0x60] sm:$0xff]  ;;  %v248_v29 = vld [vmem:[%s3730_s4 + $0x70] sm:$0xff]  ;;  %v55_v30 = vld [vmem:[%s3726_s0 + $0x18] sm:$0xff] }
  0x1a   :  { %v3160_v31 = vpack.c.bf16 %v248_v29, %v246_v28  ;;  %v56_v32 = vld [vmem:[%s3726_s0 + $0x20] sm:$0xff]  ;;  %v57_v33 = vld [vmem:[%s3726_s0 + $0x28] sm:$0xff]  ;;  %v58_v34 = vld [vmem:[%s3726_s0 + $0x30] sm:$0xff] }
  0x1b   :  { %2205 = vmatmul.mubr.msk.f32.gmra.mrb[2].mxu0 %vm75_vm1, %v53_v17  ;;  %v59_v35 = vld [vmem:[%s3726_s0 + $0x38] sm:$0xff]  ;;  %v283_v36 = vld [vmem:[%s3727_s1] sm:$0xff]  ;;  %v251_v54 = vld [vmem:[#allocation4 + $0x8] sm:$0xff] }
  0x1c   :  { %181 = vmatprep.mubr.f32.mxu0 %v2984_v0  ;;  %2316 = vmatpush1.bf16.msra.mxu0 %v3116_v18  ;;  %v61_v40 = vld [vmem:[%s3731_s5] sm:$0x3]  ;;  %v253_v55 = vld [vmem:[#allocation4 + $0x18] sm:$0xff]  ;;  %v252_v58 = vld [vmem:[#allocation4 + $0x10] sm:$0xff] }
  0x1d   :  { %2318 = vmatprep.subr.bf16.mxu0 %v3119_v19  ;;  %v3209_v41 = vrot.slane %v61_v40, %v65_v39  ;;  %v3215_v47 = vrot.slane %v61_v40, %v69_v46  ;;  %v250_v56 = vld [vmem:[#allocation4] sm:$0xff]  ;;  %v3225_v57 = vpack.c.bf16 %v253_v55, %v251_v54  ;;  %v255_v59 = vld [vmem:[#allocation4 + $0x28] sm:$0xff]  ;;  %v257_v60 = vld [vmem:[#allocation4 + $0x38] sm:$0xff] }
  0x1e   :  { %v3227_v61 = vpack.c.bf16 %v252_v58, %v250_v56  ;;  %v3229_v62 = vpack.c.bf16 %v257_v60, %v255_v59  ;;  %v254_v63 = vld [vmem:[#allocation4 + $0x20] sm:$0xff]  ;;  %v256_v1 = vld [vmem:[#allocation4 + $0x30] sm:$0xff]  ;;  %v259_v2 = vld [vmem:[#allocation4 + $0x48] sm:$0xff] }
  0x1f   :  { %2206 = vmatmul.mubr.msk.f32.gmra.mrb[4].mxu0 %vm75_vm1, %v54_v25  ;;  %2326 = vmatprep.subr.bf16.mxu1 %v3225_v57  ;;  %v261_v3 = vld [vmem:[#allocation4 + $0x58] sm:$0xff]  ;;  %v3233_v4 = vpack.c.bf16 %v256_v1, %v254_v63  ;;  %v258_v6 = vld [vmem:[#allocation4 + $0x40] sm:$0xff]  ;;  %v260_v7 = vld [vmem:[#allocation4 + $0x50] sm:$0xff] }
  0x20   :  { %187 = vmatprep.mubr.f32.mxu0 %v2984_v0  ;;  %2320 = vmatpush1.bf16.msra.mxu0 %v3143_v26  ;;  %v3236_v5 = vpack.c.bf16 %v261_v3, %v259_v2  ;;  %v263_v10 = vld [vmem:[#allocation4 + $0x68] sm:$0xff]  ;;  %v265_v11 = vld [vmem:[#allocation4 + $0x78] sm:$0xff]  ;;  %v3239_v12 = vpack.c.bf16 %v260_v7, %v258_v6  ;;  %v262_v15 = vld [vmem:[#allocation4 + $0x60] sm:$0xff] }
  0x21   :  { %2322 = vmatprep.subr.bf16.mxu0 %v3146_v27  ;;  %2328 = vmatpush1.bf16.msra.mxu1 %v3227_v61  ;;  %v3242_v13 = vpack.c.bf16 %v265_v11, %v263_v10  ;;  %v264_v16 = vld [vmem:[#allocation4 + $0x70] sm:$0xff]  ;;  %v267_v17 = vld [vmem:[#allocation4 + $0x88] sm:$0xff]  ;;  %v269_v20 = vld [vmem:[#allocation4 + $0x98] sm:$0xff] }
  0x22   :  { %2330 = vmatprep.subr.bf16.mxu1 %v3229_v62  ;;  %v3245_v21 = vpack.c.bf16 %v264_v16, %v262_v15  ;;  %v3248_v22 = vpack.c.bf16 %v269_v20, %v267_v17  ;;  %v266_v23 = vld [vmem:[#allocation4 + $0x80] sm:$0xff]  ;;  %v268_v24 = vld [vmem:[#allocation4 + $0x90] sm:$0xff]  ;;  %v271_v25 = vld [vmem:[#allocation4 + $0xa8] sm:$0xff] }
  0x23   :  { %2207 = vmatmul.mubr.msk.f32.gmra.mrb[6].mxu0 %vm75_vm1, %v55_v30  ;;  %v273_v28 = vld [vmem:[#allocation4 + $0xb8] sm:$0xff]  ;;  %v3251_v29 = vpack.c.bf16 %v268_v24, %v266_v23  ;;  %v279_v56 = vld [vmem:[#allocation4 + $0xe8] sm:$0xff]  ;;  %v278_v60 = vld [vmem:[#allocation4 + $0xe0] sm:$0xff] }
  0x24   :  { %193 = vmatprep.mubr.f32.mxu0 %v2984_v0  ;;  %2324 = vmatpush1.bf16.msra.mxu0 %v3160_v31  ;;  %v3254_v30 = vpack.c.bf16 %v273_v28, %v271_v25  ;;  %v281_v58 = vld [vmem:[#allocation4 + $0xf8] sm:$0xff]  ;;  %v280_v63 = vld [vmem:[#allocation4 + $0xf0] sm:$0xff]  ;;  %v2212_v3 = vld [vmem:[%s3727_s1 + $0x8] sm:$0xff] }
  0x25   :  { %2358 = vmatprep.subr.bf16.mxu0 %v3085_v8  ;;  %2332 = vmatpush1.bf16.msra.mxu1 %v3233_v4  ;;  %v3271_v59 = vpack.c.bf16 %v281_v58, %v279_v56  ;;  %v3274_v1 = vpack.c.bf16 %v280_v63, %v278_v60 }
  0x26   :  { %2334 = vmatprep.subr.bf16.mxu1 %v3236_v5 }
  0x27   :  { %2208 = vmatmul.mubr.msk.f32.gmra.mrb[8].mxu0 %vm75_vm1, %v56_v32  ;;  %v270_v32 = vld [vmem:[#allocation4 + $0xa0] sm:$0xff] }
  0x28   :  { %199 = vmatprep.mubr.f32.mxu0 %v2984_v0 }
  0x29   :  { %2336 = vmatpush1.bf16.msra.mxu1 %v3239_v12 }
  0x2a   :  { %2338 = vmatprep.subr.bf16.mxu1 %v3242_v13 }
  0x2b   :  { %2209 = vmatmul.mubr.msk.f32.gmra.mrb[10].mxu0 %vm75_vm1, %v57_v33  ;;  %v272_v33 = vld [vmem:[#allocation4 + $0xb0] sm:$0xff] }
  0x2c   :  { %205 = vmatprep.mubr.f32.mxu0 %v2984_v0 }
  0x2d   :  { %2340 = vmatpush1.bf16.msra.mxu1 %v3245_v21 }
  0x2e   :  { %2342 = vmatprep.subr.bf16.mxu1 %v3248_v22 }
  0x2f   :  { %2210 = vmatmul.mubr.msk.f32.gmra.mrb[12].mxu0 %vm75_vm1, %v58_v34  ;;  %v275_v34 = vld [vmem:[#allocation4 + $0xc8] sm:$0xff] }
  0x30   :  { %211 = vmatprep.mubr.f32.mxu0 %v2984_v0 }
  0x31   :  { %2344 = vmatpush1.bf16.msra.mxu1 %v3251_v29 }
  0x32   :  { %2346 = vmatprep.subr.bf16.mxu1 %v3254_v30 }
  0x33   :  { %2211 = vmatmul.mubr.msk.f32.gmra.mrb[14].mxu0 %vm75_vm1, %v59_v35  ;;  %v277_v35 = vld [vmem:[#allocation4 + $0xd8] sm:$0xff] }
  0x34   :  { %362 = vmatprep.mubr.f32.mxu0 %v2984_v0  ;;  %v3260_v40 = vpack.c.bf16 %v277_v35, %v275_v34  ;;  %v2213_v35 = vld [vmem:[%s3728_s2 + $0x8] sm:$0xff] }
  0x37   :  { %2214 = vmatmul.mubr.msk.f32.vlgmr.msra.gmra.mrb[0].mxu0 %vm294_vm2, %v283_v36  ;;  %v3257_v36 = vpack.c.bf16 %v272_v33, %v270_v32 }
  0x38   :  { %2360 = vmatpush1.bf16.msra.mxu0 %v3087_v9  ;;  %590 = vmatprep.mubr.f32.mxu0 %v2984_v0 }
  0x39   :  { %2362 = vmatprep.subr.bf16.mxu0 %v3101_v14  ;;  %2348 = vmatpush1.bf16.msra.mxu1 %v3257_v36 }
  0x3a   :  { %2350 = vmatprep.subr.bf16.mxu1 %v3260_v40 }
  0x3c   :  { %2364 = vmatpush1.bf16.msra.mxu0 %v3116_v18 }
  0x3d   :  { %2366 = vmatprep.subr.bf16.mxu0 %v3119_v19 }
  0x40   :  { %2368 = vmatpush1.bf16.msra.mxu0 %v3143_v26 }
  0x41   :  { %2370 = vmatprep.subr.bf16.mxu0 %v3146_v27 }
  0x44   :  { %2372 = vmatpush1.bf16.msra.mxu0 %v3160_v31 }
  0x45   :  { %2406 = vmatprep.subr.bf16.mxu0 %v3085_v8 }
 0x10a   :  { %v364_v42 = vpop.f32.mrb[0].mxu0 }
 0x10b   :  { %v2709_v43 = vadd.f32 %v364_v42, %v3209_v41  ;;  %v366_v44 = vpop.f32.mrb[1].mxu0  ;;  %v274_v42 = vld [vmem:[#allocation4 + $0xc0] sm:$0xff] }
 0x10c   :  { %v3218_v48 = vadd.f32 %v366_v44, %v3215_v47 }
 0x10d   :  { %v2215_v45 = vmul.f32 -1.442695, %v2709_v43  ;;  %v276_v43 = vld [vmem:[#allocation4 + $0xd0] sm:$0xff] }
 0x10e   :  { %v3263_v44 = vpack.c.bf16 %v276_v43, %v274_v42  ;;  %v282_v42 = vld [vmem:[%s3733_s7] sm:$0x3] }
 0x10f   :  { %2749 = vpow2.f32 %v2215_v45  ;;  %v2216_v45 = vmul.f32 -1.442695, %v3218_v48  ;;  %v3324_v43 = vrot.slane %v282_v42, %v65_v39  ;;  %v3329_v56 = vrot.slane %v282_v42, %v69_v46 }
 0x110   :  { %2751 = vtanh.f32 %v3218_v48  ;;  %2352 = vmatpush1.bf16.msra.mxu1 %v3263_v44 }
 0x111   :  { %2354 = vmatprep.subr.bf16.mxu1 %v3271_v59 }
 0x114   :  { %2356 = vmatpush1.bf16.msra.mxu1 %v3274_v1 }
 0x115   :  { %2374 = vmatprep.subr.bf16.mxu1 %v3225_v57 }
 0x119   :  { %v2750_v49 = vpop.eup %2749 }
 0x11a   :  { %v374_v50 = vadd.f32 1.0, %v2750_v49  ;;  %v2752_v51 = vpop.eup %2751 }
 0x11c   :  { %2753 = vrcp.f32 %v374_v50  ;;  %v386_v50 = vpop.permute.xlu0 %385 }
 0x11d   :  { %2755 = vpow2.f32 %v2216_v45 }
 0x126   :  { %v3221_v52 = vpop.eup %2753 }
 0x127   :  { %v389_v53 = vmul.f32 %v3221_v52, %v2752_v51  ;;  %v2756_v49 = vpop.eup %2755 }
 0x128   :  { %v381_v51 = vadd.f32 1.0, %v2756_v49 }
 0x129   :  { %391 = vrot.lane.b32.xlu0 %v389_v53, %s2985_s13  ;;  %v388_v53 = vmul.f32 %v3221_v52, %v386_v50 }
 0x12a   :  { %2757 = vrcp.f32 %v381_v51 }
 0x134   :  { %v2758_v48 = vpop.eup %2757 }
 0x19b   :  { %v392_v54 = vpop.permute.xlu0 %391 }
 0x19c   :  { %v3269_v55 = vadd.f32 %v392_v54, %v388_v53 }
 0x19e   :  { %2759 = vtanh.f32 %v3269_v55 }
 0x1a8   :  { %v2760_v52 = vpop.eup %2759 }
 0x1a9   :  { %v396_v2 = vmul.f32 %v2760_v52, %v2758_v48 }
 0x1ab   :  { %398 = vrot.lane.b32.xlu1 %v396_v2, %s2985_s13 }
 0x1af   :  { %402 = vrot.lane.b32.xlu1 %v2212_v3, %s2985_s13 }
 0x21d   :  { %v399_v6 = vpop.permute.xlu1 %398 }
 0x21e   :  { %2219 = vmatmul.mubr.msk.f32.vlgmr.msra.gmra.mrb[2].mxu0 %vm294_vm2, %v399_v6 }
 0x21f   :  { %2408 = vmatpush1.bf16.msra.mxu0 %v3087_v9  ;;  %796 = vmatprep.mubr.f32.mxu0 %v2984_v0 }
 0x220   :  { %2410 = vmatprep.subr.bf16.mxu0 %v3101_v14 }
 0x221   :  { %v403_v7 = vpop.permute.xlu1 %402 }
 0x222   :  { %v405_v10 = vsel %vm294_vm2, %v399_v6, %v403_v7 }
 0x223   :  { %482 = vmatmul.mubr.f32.vlgmr.msra.gmra.mrb[0].mxu1 %v405_v10  ;;  %2412 = vmatpush1.bf16.msra.mxu0 %v3116_v18 }
 0x224   :  { %2376 = vmatpush1.bf16.msra.mxu1 %v3227_v61  ;;  %2414 = vmatprep.subr.bf16.mxu0 %v3119_v19 }
 0x225   :  { %2378 = vmatprep.subr.bf16.mxu1 %v3229_v62  ;;  %690 = vmatprep.mubr.f32.mxu1 %v2984_v0 }
 0x227   :  { %2416 = vmatpush1.bf16.msra.mxu0 %v3143_v26 }
 0x228   :  { %2380 = vmatpush1.bf16.msra.mxu1 %v3233_v4  ;;  %2418 = vmatprep.subr.bf16.mxu0 %v3146_v27 }
 0x229   :  { %2382 = vmatprep.subr.bf16.mxu1 %v3236_v5 }
 0x22b   :  { %2420 = vmatpush1.bf16.msra.mxu0 %v3160_v31 }
 0x22c   :  { %2384 = vmatpush1.bf16.msra.mxu1 %v3239_v12  ;;  %2454 = vmatprep.subr.bf16.mxu0 %v3085_v8 }
 0x22d   :  { %2386 = vmatprep.subr.bf16.mxu1 %v3242_v13 }
 0x230   :  { %2388 = vmatpush1.bf16.msra.mxu1 %v3245_v21 }
 0x231   :  { %2390 = vmatprep.subr.bf16.mxu1 %v3248_v22 }
 0x234   :  { %2392 = vmatpush1.bf16.msra.mxu1 %v3251_v29 }
 0x235   :  { %2394 = vmatprep.subr.bf16.mxu1 %v3254_v30 }
 0x238   :  { %2396 = vmatpush1.bf16.msra.mxu1 %v3257_v36 }
 0x239   :  { %2398 = vmatprep.subr.bf16.mxu1 %v3260_v40 }
 0x23c   :  { %2400 = vmatpush1.bf16.msra.mxu1 %v3263_v44 }
 0x23d   :  { %2402 = vmatprep.subr.bf16.mxu1 %v3271_v59 }
 0x240   :  { %2404 = vmatpush1.bf16.msra.mxu1 %v3274_v1 }
 0x241   :  { %2422 = vmatprep.subr.bf16.mxu1 %v3225_v57 }
 0x2f1   :  { %v592_v11 = vpop.f32.mrb[2].mxu0 }
 0x2f2   :  { %v2711_v15 = vadd.f32 %v592_v11, %v3209_v41  ;;  %v594_v16 = vpop.f32.mrb[3].mxu0 }
 0x2f3   :  { %v2712_v24 = vadd.f32 %v594_v16, %v3215_v47 }
 0x2f4   :  { %v2220_v17 = vmul.f32 -1.442695, %v2711_v15 }
 0x2f5   :  { %v2221_v49 = vmul.f32 -1.442695, %v2712_v24 }
 0x2f6   :  { %2761 = vpow2.f32 %v2220_v17  ;;  %v483_v20 = vpop.f32.mrb[0].mxu1 }
 0x2f7   :  { %v485_v23 = vpop.f32.mrb[1].mxu1  ;;  %2763 = vtanh.f32 %v2712_v24  ;;  %v484_v45 = vadd.f32 %v483_v20, %v3324_v43 }
 0x2f8   :  { %v486_v39 = vadd.f32 %v485_v23, %v3329_v56 }
 0x2f9   :  { %v2217_v50 = vmul.f32 -1.442695, %v484_v45 }
 0x300   :  { %v2762_v25 = vpop.eup %2761 }
 0x301   :  { %v602_v28 = vadd.f32 1.0, %v2762_v25  ;;  %v2764_v32 = vpop.eup %2763 }
 0x303   :  { %2765 = vrcp.f32 %v602_v28 }
 0x304   :  { %2767 = vpow2.f32 %v2221_v49 }
 0x305   :  { %2769 = vpow2.f32 %v2217_v50 }
 0x30d   :  { %v2766_v33 = vpop.eup %2765 }
 0x30e   :  { %v613_v34 = vmul.f32 %v2766_v33, %v2764_v32  ;;  %v2768_v51 = vpop.eup %2767  ;;  %v612_v58 = vmul.f32 %v2766_v33, %v3269_v55  ;;  %v2218_v55 = vmul.f32 -1.442695, %v486_v39 }
 0x30f   :  { %v2770_v53 = vpop.eup %2769  ;;  %v609_v54 = vadd.f32 1.0, %v2768_v51 }
 0x310   :  { %615 = vrot.lane.b32.xlu0 %v613_v34, %s2985_s13  ;;  %v491_v63 = vadd.f32 1.0, %v2770_v53 }
 0x311   :  { %2771 = vrcp.f32 %v609_v54 }
 0x314   :  { %502 = vrot.lane.b32.xlu0 %v2213_v35, %s2985_s13 }
 0x31b   :  { %v2772_v52 = vpop.eup %2771 }
 0x382   :  { %v616_v60 = vpop.permute.xlu0 %615 }
 0x383   :  { %v3332_v48 = vadd.f32 %v616_v60, %v612_v58 }
 0x385   :  { %2773 = vtanh.f32 %v3332_v48 }
 0x386   :  { %2775 = vrcp.f32 %v491_v63  ;;  %v503_v10 = vpop.permute.xlu0 %502 }
 0x387   :  { %2777 = vtanh.f32 %v486_v39 }
 0x388   :  { %2779 = vpow2.f32 %v2218_v55 }
 0x38f   :  { %v2774_v2 = vpop.eup %2773 }
 0x390   :  { %v620_v3 = vmul.f32 %v2774_v2, %v2772_v52  ;;  %v2776_v6 = vpop.eup %2775 }
 0x391   :  { %v2778_v38 = vpop.eup %2777  ;;  %v505_v16 = vmul.f32 %v2776_v6, %v503_v10 }
 0x392   :  { %622 = vrot.lane.b32.xlu1 %v620_v3, %s2985_s13  ;;  %v506_v46 = vmul.f32 %v2778_v38, %v2776_v6  ;;  %v2780_v7 = vpop.eup %2779 }
 0x393   :  { %v498_v15 = vadd.f32 1.0, %v2780_v7 }
 0x395   :  { %2781 = vrcp.f32 %v498_v15 }
 0x396   :  { %508 = vrot.lane.b32.xlu1 %v506_v46, %s2985_s13 }
 0x39f   :  { %v2782_v23 = vpop.eup %2781 }
 0x404   :  { %v623_v11 = vpop.permute.xlu1 %622 }
 0x405   :  { %2224 = vmatmul.mubr.msk.f32.vlgmr.msra.gmra.mrb[4].mxu0 %vm294_vm2, %v623_v11 }
 0x406   :  { %2456 = vmatpush1.bf16.msra.mxu0 %v3087_v9  ;;  %1002 = vmatprep.mubr.f32.mxu0 %v2984_v0 }
 0x407   :  { %2458 = vmatprep.subr.bf16.mxu0 %v3101_v14 }
 0x408   :  { %v509_v17 = vpop.permute.xlu1 %508 }
 0x409   :  { %v3342_v20 = vadd.f32 %v509_v17, %v505_v16 }
 0x40a   :  { %2460 = vmatpush1.bf16.msra.mxu0 %v3116_v18 }
 0x40b   :  { %2783 = vtanh.f32 %v3342_v20  ;;  %2462 = vmatprep.subr.bf16.mxu0 %v3119_v19 }
 0x40e   :  { %2464 = vmatpush1.bf16.msra.mxu0 %v3143_v26 }
 0x40f   :  { %2466 = vmatprep.subr.bf16.mxu0 %v3146_v27 }
 0x412   :  { %2468 = vmatpush1.bf16.msra.mxu0 %v3160_v31 }
 0x413   :  { %2470 = vmatprep.subr.bf16.mxu0 %v3225_v57 }
 0x415   :  { %v2784_v24 = vpop.eup %2783 }
 0x416   :  { %v3351_v25 = vmul.f32 %v2784_v24, %v2782_v23 }
 0x418   :  { %v625_v28 = vsel %vm294_vm2, %v623_v11, %v3351_v25 }
 0x419   :  { %691 = vmatmul.mubr.f32.vlgmr.msra.gmra.mrb[2].mxu1 %v625_v28 }
 0x41a   :  { %2424 = vmatpush1.bf16.msra.mxu1 %v3227_v61  ;;  %896 = vmatprep.mubr.f32.mxu1 %v2984_v0 }
 0x41b   :  { %2426 = vmatprep.subr.bf16.mxu1 %v3229_v62 }
 0x41e   :  { %2428 = vmatpush1.bf16.msra.mxu1 %v3233_v4 }
 0x41f   :  { %2430 = vmatprep.subr.bf16.mxu1 %v3236_v5 }
 0x422   :  { %2432 = vmatpush1.bf16.msra.mxu1 %v3239_v12 }
 0x423   :  { %2434 = vmatprep.subr.bf16.mxu1 %v3242_v13 }
 0x426   :  { %2436 = vmatpush1.bf16.msra.mxu1 %v3245_v21 }
 0x427   :  { %2438 = vmatprep.subr.bf16.mxu1 %v3248_v22 }
 0x42a   :  { %2440 = vmatpush1.bf16.msra.mxu1 %v3251_v29 }
 0x42b   :  { %2442 = vmatprep.subr.bf16.mxu1 %v3254_v30 }
 0x42e   :  { %2444 = vmatpush1.bf16.msra.mxu1 %v3257_v36 }
 0x42f   :  { %2446 = vmatprep.subr.bf16.mxu1 %v3260_v40 }
 0x432   :  { %2448 = vmatpush1.bf16.msra.mxu1 %v3263_v44 }
 0x433   :  { %2450 = vmatprep.subr.bf16.mxu1 %v3271_v59 }
 0x436   :  { %2452 = vmatpush1.bf16.msra.mxu1 %v3274_v1 }
 0x437   :  { %2518 = vmatprep.subr.bf16.mxu1 %v3225_v57 }
 0x4d8   :  { %v798_v32 = vpop.f32.mrb[4].mxu0 }
 0x4d9   :  { %v2713_v33 = vadd.f32 %v798_v32, %v3209_v41  ;;  %v800_v34 = vpop.f32.mrb[5].mxu0 }
 0x4da   :  { %v2714_v42 = vadd.f32 %v800_v34, %v3215_v47 }
 0x4db   :  { %v2225_v35 = vmul.f32 -1.442695, %v2713_v33 }
 0x4dc   :  { %v2226_v46 = vmul.f32 -1.442695, %v2714_v42 }
 0x4dd   :  { %2785 = vpow2.f32 %v2225_v35 }
 0x4de   :  { %2787 = vtanh.f32 %v2714_v42 }
 0x4e7   :  { %v2786_v45 = vpop.eup %2785 }
 0x4e8   :  { %v808_v49 = vadd.f32 1.0, %v2786_v45  ;;  %v2788_v58 = vpop.eup %2787 }
 0x4ea   :  { %2789 = vrcp.f32 %v808_v49 }
 0x4ec   :  { %v692_v50 = vpop.f32.mrb[2].mxu1 }
 0x4ed   :  { %v693_v51 = vadd.f32 %v692_v50, %v3324_v43  ;;  %v694_v53 = vpop.f32.mrb[3].mxu1 }
 0x4ee   :  { %v695_v39 = vadd.f32 %v694_v53, %v3329_v56 }
 0x4ef   :  { %v2222_v54 = vmul.f32 -1.442695, %v693_v51 }
 0x4f0   :  { %v2223_v24 = vmul.f32 -1.442695, %v695_v39 }
 0x4f1   :  { %2791 = vpow2.f32 %v2222_v54 }
 0x4f2   :  { %2793 = vtanh.f32 %v695_v39 }
 0x4f4   :  { %v2790_v60 = vpop.eup %2789 }
 0x4f5   :  { %v819_v63 = vmul.f32 %v2790_v60, %v2788_v58  ;;  %v818_v10 = vmul.f32 %v2790_v60, %v3332_v48 }
 0x4f7   :  { %821 = vrot.lane.b32.xlu0 %v819_v63, %s2985_s13 }
 0x4fb   :  { %v2792_v52 = vpop.eup %2791 }
 0x4fc   :  { %v700_v2 = vadd.f32 1.0, %v2792_v52  ;;  %v2794_v3 = vpop.eup %2793 }
 0x4fe   :  { %2795 = vrcp.f32 %v700_v2 }
 0x4ff   :  { %2797 = vpow2.f32 %v2226_v46 }
 0x508   :  { %v2796_v6 = vpop.eup %2795 }
 0x509   :  { %v711_v38 = vmul.f32 %v2796_v6, %v2794_v3  ;;  %v2798_v55 = vpop.eup %2797  ;;  %v710_v32 = vmul.f32 %v2796_v6, %v3342_v20 }
 0x50a   :  { %v815_v7 = vadd.f32 1.0, %v2798_v55 }
 0x50b   :  { %713 = vrot.lane.b32.xlu0 %v711_v38, %s2985_s13 }
 0x50c   :  { %2799 = vrcp.f32 %v815_v7 }
 0x516   :  { %v2800_v16 = vpop.eup %2799 }
 0x569   :  { %v822_v11 = vpop.permute.xlu0 %821 }
 0x56a   :  { %v3379_v15 = vadd.f32 %v822_v11, %v818_v10 }
 0x56c   :  { %2801 = vtanh.f32 %v3379_v15 }
 0x56d   :  { %2803 = vpow2.f32 %v2223_v24 }
 0x576   :  { %v2802_v17 = vpop.eup %2801 }
 0x577   :  { %v826_v23 = vmul.f32 %v2802_v17, %v2800_v16  ;;  %v2804_v33 = vpop.eup %2803 }
 0x578   :  { %v707_v48 = vadd.f32 1.0, %v2804_v33 }
 0x579   :  { %828 = vrot.lane.b32.xlu1 %v826_v23, %s2985_s13 }
 0x57d   :  { %v714_v28 = vpop.permute.xlu0 %713 }
 0x57e   :  { %v3384_v34 = vadd.f32 %v714_v28, %v710_v32 }
 0x580   :  { %2805 = vtanh.f32 %v3384_v34 }
 0x581   :  { %2807 = vrcp.f32 %v707_v48 }
 0x58a   :  { %v2806_v35 = vpop.eup %2805 }
 0x58b   :  { %v2808_v42 = vpop.eup %2807 }
 0x58c   :  { %v3387_v45 = vmul.f32 %v2808_v42, %v2806_v35 }
 0x5eb   :  { %v829_v49 = vpop.permute.xlu1 %828 }
 0x5ec   :  { %v831_v50 = vsel %vm294_vm2, %v829_v49, %v3387_v45  ;;  %2229 = vmatmul.mubr.msk.f32.vlgmr.msra.gmra.mrb[6].mxu0 %vm294_vm2, %v829_v49 }
 0x5ed   :  { %897 = vmatmul.mubr.f32.vlgmr.msra.gmra.mrb[4].mxu1 %v831_v50  ;;  %2472 = vmatpush1.bf16.msra.mxu0 %v3227_v61 }
 0x5ee   :  { %2474 = vmatprep.subr.bf16.mxu0 %v3229_v62  ;;  %1102 = vmatprep.mubr.f32.mxu0 %v2984_v0 }
 0x5ef   :  { %2520 = vmatpush1.bf16.msra.mxu1 %v3227_v61  ;;  %1308 = vmatprep.mubr.f32.mxu1 %v2984_v0 }
 0x5f0   :  { %2522 = vmatprep.subr.bf16.mxu1 %v3229_v62 }
 0x5f1   :  { %2476 = vmatpush1.bf16.msra.mxu0 %v3233_v4 }
 0x5f2   :  { %2478 = vmatprep.subr.bf16.mxu0 %v3236_v5 }
 0x5f3   :  { %2524 = vmatpush1.bf16.msra.mxu1 %v3233_v4 }
 0x5f4   :  { %2526 = vmatprep.subr.bf16.mxu1 %v3236_v5 }
 0x5f5   :  { %2480 = vmatpush1.bf16.msra.mxu0 %v3239_v12 }
 0x5f6   :  { %2482 = vmatprep.subr.bf16.mxu0 %v3242_v13 }
 0x5f7   :  { %2528 = vmatpush1.bf16.msra.mxu1 %v3239_v12 }
 0x5f8   :  { %2530 = vmatprep.subr.bf16.mxu1 %v3242_v13 }
 0x5f9   :  { %2484 = vmatpush1.bf16.msra.mxu0 %v3245_v21 }
 0x5fa   :  { %2486 = vmatprep.subr.bf16.mxu0 %v3248_v22 }
 0x5fb   :  { %2532 = vmatpush1.bf16.msra.mxu1 %v3245_v21 }
 0x5fc   :  { %2534 = vmatprep.subr.bf16.mxu1 %v3248_v22 }
 0x5fd   :  { %2488 = vmatpush1.bf16.msra.mxu0 %v3251_v29 }
 0x5fe   :  { %2490 = vmatprep.subr.bf16.mxu0 %v3254_v30 }
 0x5ff   :  { %2536 = vmatpush1.bf16.msra.mxu1 %v3251_v29 }
 0x600   :  { %2538 = vmatprep.subr.bf16.mxu1 %v3254_v30 }
 0x601   :  { %2492 = vmatpush1.bf16.msra.mxu0 %v3257_v36 }
 0x602   :  { %2494 = vmatprep.subr.bf16.mxu0 %v3260_v40 }
 0x603   :  { %2540 = vmatpush1.bf16.msra.mxu1 %v3257_v36 }
 0x604   :  { %2542 = vmatprep.subr.bf16.mxu1 %v3260_v40 }
 0x605   :  { %2496 = vmatpush1.bf16.msra.mxu0 %v3263_v44 }
 0x606   :  { %2498 = vmatprep.subr.bf16.mxu0 %v3271_v59 }
 0x607   :  { %2544 = vmatpush1.bf16.msra.mxu1 %v3263_v44 }
 0x608   :  { %2546 = vmatprep.subr.bf16.mxu1 %v3271_v59 }
 0x609   :  { %2500 = vmatpush1.bf16.msra.mxu0 %v3274_v1 }
 0x60a   :  { %2502 = vmatprep.subr.bf16.mxu0 %v3085_v8 }
 0x60b   :  { %2548 = vmatpush1.bf16.msra.mxu1 %v3274_v1 }
 0x60c   :  { %2566 = vmatprep.subr.bf16.mxu1 %v3225_v57 }
 0x6bf   :  { %v1004_v20 = vpop.f32.mrb[6].mxu0 }
 0x6c0   :  { %v2715_v51 = vadd.f32 %v1004_v20, %v3209_v41  ;;  %v898_v53 = vpop.f32.mrb[4].mxu1  ;;  %v1006_v54 = vpop.f32.mrb[7].mxu0 }
 0x6c1   :  { %v899_v58 = vadd.f32 %v898_v53, %v3324_v43  ;;  %v900_v60 = vpop.f32.mrb[5].mxu1  ;;  %v2716_v52 = vadd.f32 %v1006_v54, %v3215_v47 }
 0x6c2   :  { %v2230_v63 = vmul.f32 -1.442695, %v2715_v51  ;;  %v901_v2 = vadd.f32 %v900_v60, %v3329_v56 }
 0x6c3   :  { %v2227_v39 = vmul.f32 -1.442695, %v899_v58  ;;  %v2231_v23 = vmul.f32 -1.442695, %v2716_v52 }
 0x6c4   :  { %2809 = vpow2.f32 %v2230_v63  ;;  %v2228_v50 = vmul.f32 -1.442695, %v901_v2 }
 0x6c5   :  { %2811 = vpow2.f32 %v2227_v39 }
 0x6c6   :  { %2813 = vtanh.f32 %v2716_v52 }
 0x6c7   :  { %2815 = vtanh.f32 %v901_v2 }
 0x6ce   :  { %v2810_v3 = vpop.eup %2809 }
 0x6cf   :  { %v2812_v6 = vpop.eup %2811  ;;  %v1014_v38 = vadd.f32 1.0, %v2810_v3 }
 0x6d0   :  { %v906_v46 = vadd.f32 1.0, %v2812_v6  ;;  %v2814_v55 = vpop.eup %2813 }
 0x6d1   :  { %2817 = vrcp.f32 %v1014_v38  ;;  %v2816_v7 = vpop.eup %2815 }
 0x6d2   :  { %2819 = vrcp.f32 %v906_v46 }
 0x6d3   :  { %2821 = vpow2.f32 %v2231_v23 }
 0x6db   :  { %v2818_v10 = vpop.eup %2817 }
 0x6dc   :  { %v2820_v11 = vpop.eup %2819  ;;  %v1025_v16 = vmul.f32 %v2818_v10, %v2814_v55  ;;  %v1024_v32 = vmul.f32 %v2818_v10, %v3379_v15 }
 0x6dd   :  { %v917_v17 = vmul.f32 %v2820_v11, %v2816_v7  ;;  %v2822_v24 = vpop.eup %2821  ;;  %v916_v51 = vmul.f32 %v2820_v11, %v3384_v34 }
 0x6de   :  { %1027 = vrot.lane.b32.xlu1 %v1025_v16, %s2985_s13  ;;  %v1021_v28 = vadd.f32 1.0, %v2822_v24 }
 0x6df   :  { %919 = vrot.lane.b32.xlu0 %v917_v17, %s2985_s13 }
 0x6e0   :  { %2823 = vrcp.f32 %v1021_v28 }
 0x6ea   :  { %v2824_v35 = vpop.eup %2823 }
 0x750   :  { %v1028_v33 = vpop.permute.xlu1 %1027 }
 0x751   :  { %v3433_v48 = vadd.f32 %v1028_v33, %v1024_v32  ;;  %v920_v20 = vpop.permute.xlu0 %919 }
 0x752   :  { %v3438_v54 = vadd.f32 %v920_v20, %v916_v51 }
 0x753   :  { %2825 = vtanh.f32 %v3433_v48 }
 0x754   :  { %2827 = vpow2.f32 %v2228_v50 }
 0x755   :  { %2829 = vtanh.f32 %v3438_v54 }
 0x75d   :  { %v2826_v42 = vpop.eup %2825 }
 0x75e   :  { %v1032_v49 = vmul.f32 %v2826_v42, %v2824_v35  ;;  %v2828_v53 = vpop.eup %2827 }
 0x75f   :  { %v913_v15 = vadd.f32 1.0, %v2828_v53  ;;  %v2830_v58 = vpop.eup %2829 }
 0x760   :  { %1034 = vrot.lane.b32.xlu1 %v1032_v49, %s2985_s13 }
 0x761   :  { %2831 = vrcp.f32 %v913_v15 }
 0x76b   :  { %v2832_v60 = vpop.eup %2831 }
 0x76c   :  { %v3441_v63 = vmul.f32 %v2832_v60, %v2830_v58 }
 0x7d2   :  { %v1035_v39 = vpop.permute.xlu1 %1034 }
 0x7d3   :  { %v1037_v52 = vsel %vm294_vm2, %v1035_v39, %v3441_v63 }
 0x7d4   :  { %1103 = vmatmul.mubr.f32.vlgmr.msra.gmra.mrb[16].mxu0 %v1037_v52 }
 0x7d5   :  { %2504 = vmatpush1.bf16.msra.mxu0 %v3087_v9  ;;  %1208 = vmatprep.mubr.f32.mxu0 %v2984_v0 }
 0x7d6   :  { %2506 = vmatprep.subr.bf16.mxu0 %v3101_v14 }
 0x7d9   :  { %2508 = vmatpush1.bf16.msra.mxu0 %v3116_v18 }
 0x7da   :  { %2510 = vmatprep.subr.bf16.mxu0 %v3119_v19 }
 0x7dd   :  { %2512 = vmatpush1.bf16.msra.mxu0 %v3143_v26 }
 0x7de   :  { %2514 = vmatprep.subr.bf16.mxu0 %v3146_v27 }
 0x7e1   :  { %2516 = vmatpush1.bf16.msra.mxu0 %v3160_v31 }
 0x7e2   :  { %2550 = vmatprep.subr.bf16.mxu0 %v3085_v8 }
 0x7e4   :  { %2234 = vmatmul.mubr.msk.f32.vlgmr.msra.gmra.mrb[8].mxu0 %vm294_vm2, %v1035_v39 }
 0x7e5   :  { %2552 = vmatpush1.bf16.msra.mxu0 %v3087_v9  ;;  %1414 = vmatprep.mubr.f32.mxu0 %v2984_v0 }
 0x7e6   :  { %2554 = vmatprep.subr.bf16.mxu0 %v3101_v14 }
 0x7e9   :  { %2556 = vmatpush1.bf16.msra.mxu0 %v3116_v18 }
 0x7ea   :  { %2558 = vmatprep.subr.bf16.mxu0 %v3119_v19 }
 0x7ed   :  { %2560 = vmatpush1.bf16.msra.mxu0 %v3143_v26 }
 0x7ee   :  { %2562 = vmatprep.subr.bf16.mxu0 %v3146_v27 }
 0x7f1   :  { %2564 = vmatpush1.bf16.msra.mxu0 %v3160_v31 }
 0x7f2   :  { %2598 = vmatprep.subr.bf16.mxu0 %v3085_v8 }
 0x8a7   :  { %v1104_v34 = vpop.f32.mrb[16].mxu0 }
 0x8a8   :  { %v1105_v2 = vadd.f32 %v1104_v34, %v3324_v43  ;;  %v1106_v3 = vpop.f32.mrb[17].mxu0 }
 0x8a9   :  { %v1107_v38 = vadd.f32 %v1106_v3, %v3329_v56 }
 0x8aa   :  { %v2232_v6 = vmul.f32 -1.442695, %v1105_v2 }
 0x8ab   :  { %v2233_v34 = vmul.f32 -1.442695, %v1107_v38 }
 0x8ac   :  { %2833 = vpow2.f32 %v2232_v6 }
 0x8ad   :  { %2835 = vtanh.f32 %v1107_v38 }
 0x8b6   :  { %v2834_v46 = vpop.eup %2833 }
 0x8b7   :  { %v1112_v55 = vadd.f32 1.0, %v2834_v46  ;;  %v1210_v7 = vpop.f32.mrb[8].mxu0  ;;  %v2836_v17 = vpop.eup %2835 }
 0x8b8   :  { %v2717_v10 = vadd.f32 %v1210_v7, %v3209_v41  ;;  %v1212_v11 = vpop.f32.mrb[9].mxu0 }
 0x8b9   :  { %2837 = vrcp.f32 %v1112_v55  ;;  %v2718_v24 = vadd.f32 %v1212_v11, %v3215_v47 }
 0x8ba   :  { %v2235_v16 = vmul.f32 -1.442695, %v2717_v10 }
 0x8bb   :  { %v2236_v50 = vmul.f32 -1.442695, %v2718_v24 }
 0x8bc   :  { %2839 = vpow2.f32 %v2235_v16 }
 0x8bd   :  { %2841 = vtanh.f32 %v2718_v24 }
 0x8c3   :  { %v2838_v23 = vpop.eup %2837 }
 0x8c4   :  { %v1123_v28 = vmul.f32 %v2838_v23, %v2836_v17  ;;  %v1122_v3 = vmul.f32 %v2838_v23, %v3438_v54 }
 0x8c6   :  { %v2840_v32 = vpop.eup %2839 }
 0x8c7   :  { %v1220_v33 = vadd.f32 1.0, %v2840_v32  ;;  %v2842_v35 = vpop.eup %2841 }
 0x8c9   :  { %2843 = vrcp.f32 %v1220_v33 }
 0x8ca   :  { %2845 = vpow2.f32 %v2236_v50 }
 0x8d3   :  { %v2844_v42 = vpop.eup %2843 }
 0x8d4   :  { %v1231_v49 = vmul.f32 %v2844_v42, %v2842_v35  ;;  %v2846_v20 = vpop.eup %2845  ;;  %v1230_v53 = vmul.f32 %v2844_v42, %v3433_v48 }
 0x8d5   :  { %v1227_v51 = vadd.f32 1.0, %v2846_v20 }
 0x8d6   :  { %1233 = vrot.lane.b32.xlu0 %v1231_v49, %s2985_s13 }
 0x8d7   :  { %2847 = vrcp.f32 %v1227_v51 }
 0x8da   :  { %1125 = vrot.lane.b32.xlu0 %v1123_v28, %s2985_s13 }
 0x8e1   :  { %v2848_v60 = vpop.eup %2847 }
 0x948   :  { %v1234_v15 = vpop.permute.xlu0 %1233 }
 0x949   :  { %v3471_v58 = vadd.f32 %v1234_v15, %v1230_v53 }
 0x94b   :  { %2849 = vtanh.f32 %v3471_v58 }
 0x94c   :  { %2851 = vpow2.f32 %v2233_v34  ;;  %v1126_v2 = vpop.permute.xlu0 %1125 }
 0x94d   :  { %v3476_v46 = vadd.f32 %v1126_v2, %v1122_v3 }
 0x94f   :  { %2853 = vtanh.f32 %v3476_v46 }
 0x955   :  { %v2850_v39 = vpop.eup %2849 }
 0x956   :  { %v1238_v52 = vmul.f32 %v2850_v39, %v2848_v60  ;;  %v2852_v6 = vpop.eup %2851 }
 0x957   :  { %v1119_v48 = vadd.f32 1.0, %v2852_v6 }
 0x958   :  { %1240 = vrot.lane.b32.xlu1 %v1238_v52, %s2985_s13 }
 0x959   :  { %2855 = vrcp.f32 %v1119_v48  ;;  %v2854_v55 = vpop.eup %2853 }
 0x963   :  { %v2856_v7 = vpop.eup %2855 }
 0x964   :  { %v3479_v10 = vmul.f32 %v2856_v7, %v2854_v55 }
 0x9ca   :  { %v1241_v11 = vpop.permute.xlu1 %1240 }
 0x9cb   :  { %v1243_v16 = vsel %vm294_vm2, %v1241_v11, %v3479_v10  ;;  %2239 = vmatmul.mubr.msk.f32.vlgmr.msra.gmra.mrb[10].mxu0 %vm294_vm2, %v1241_v11 }
 0x9cc   :  { %1309 = vmatmul.mubr.f32.vlgmr.msra.gmra.mrb[6].mxu1 %v1243_v16  ;;  %2600 = vmatpush1.bf16.msra.mxu0 %v3087_v9 }
 0x9cd   :  { %2568 = vmatpush1.bf16.msra.mxu1 %v3227_v61  ;;  %2602 = vmatprep.subr.bf16.mxu0 %v3101_v14 }
 0x9ce   :  { %2570 = vmatprep.subr.bf16.mxu1 %v3229_v62  ;;  %1620 = vmatprep.mubr.f32.mxu0 %v2984_v0 }
 0x9cf   :  { %1514 = vmatprep.mubr.f32.mxu1 %v2984_v0 }
 0x9d0   :  { %2604 = vmatpush1.bf16.msra.mxu0 %v3116_v18 }
 0x9d1   :  { %2572 = vmatpush1.bf16.msra.mxu1 %v3233_v4  ;;  %2606 = vmatprep.subr.bf16.mxu0 %v3119_v19 }
 0x9d2   :  { %2574 = vmatprep.subr.bf16.mxu1 %v3236_v5 }
 0x9d4   :  { %2608 = vmatpush1.bf16.msra.mxu0 %v3143_v26 }
 0x9d5   :  { %2576 = vmatpush1.bf16.msra.mxu1 %v3239_v12  ;;  %2610 = vmatprep.subr.bf16.mxu0 %v3146_v27 }
 0x9d6   :  { %2578 = vmatprep.subr.bf16.mxu1 %v3242_v13 }
 0x9d8   :  { %2612 = vmatpush1.bf16.msra.mxu0 %v3160_v31 }
 0x9d9   :  { %2580 = vmatpush1.bf16.msra.mxu1 %v3245_v21  ;;  %2646 = vmatprep.subr.bf16.mxu0 %v3085_v8 }
 0x9da   :  { %2582 = vmatprep.subr.bf16.mxu1 %v3248_v22 }
 0x9dd   :  { %2584 = vmatpush1.bf16.msra.mxu1 %v3251_v29 }
 0x9de   :  { %2586 = vmatprep.subr.bf16.mxu1 %v3254_v30 }
 0x9e1   :  { %2588 = vmatpush1.bf16.msra.mxu1 %v3257_v36 }
 0x9e2   :  { %2590 = vmatprep.subr.bf16.mxu1 %v3260_v40 }
 0x9e5   :  { %2592 = vmatpush1.bf16.msra.mxu1 %v3263_v44 }
 0x9e6   :  { %2594 = vmatprep.subr.bf16.mxu1 %v3271_v59 }
 0x9e9   :  { %2596 = vmatpush1.bf16.msra.mxu1 %v3274_v1 }
 0x9ea   :  { %2614 = vmatprep.subr.bf16.mxu1 %v3225_v57 }
 0xa9e   :  { %v1416_v54 = vpop.f32.mrb[10].mxu0 }
 0xa9f   :  { %v2719_v8 = vadd.f32 %v1416_v54, %v3209_v41  ;;  %v1310_v38 = vpop.f32.mrb[6].mxu1  ;;  %v1418_v17 = vpop.f32.mrb[11].mxu0 }
 0xaa0   :  { %v1311_v23 = vadd.f32 %v1310_v38, %v3324_v43  ;;  %v1312_v24 = vpop.f32.mrb[7].mxu1  ;;  %v2720_v33 = vadd.f32 %v1418_v17, %v3215_v47 }
 0xaa1   :  { %v2240_v28 = vmul.f32 -1.442695, %v2719_v8  ;;  %v1313_v35 = vadd.f32 %v1312_v24, %v3329_v56 }
 0xaa2   :  { %v2237_v32 = vmul.f32 -1.442695, %v1311_v23  ;;  %v2241_v34 = vmul.f32 -1.442695, %v2720_v33 }
 0xaa3   :  { %2857 = vpow2.f32 %v2240_v28  ;;  %v2238_v54 = vmul.f32 -1.442695, %v1313_v35 }
 0xaa4   :  { %2859 = vpow2.f32 %v2237_v32 }
 0xaa5   :  { %2861 = vtanh.f32 %v2720_v33 }
 0xaa6   :  { %2863 = vtanh.f32 %v1313_v35 }
 0xaad   :  { %v2858_v42 = vpop.eup %2857 }
 0xaae   :  { %v2860_v49 = vpop.eup %2859  ;;  %v1426_v50 = vadd.f32 1.0, %v2858_v42 }
 0xaaf   :  { %v1318_v20 = vadd.f32 1.0, %v2860_v49  ;;  %v2862_v51 = vpop.eup %2861 }
 0xab0   :  { %2865 = vrcp.f32 %v1426_v50  ;;  %v2864_v53 = vpop.eup %2863 }
 0xab1   :  { %2867 = vrcp.f32 %v1318_v20 }
 0xab2   :  { %2869 = vpow2.f32 %v2241_v34 }
 0xaba   :  { %v2866_v15 = vpop.eup %2865 }
 0xabb   :  { %v2868_v60 = vpop.eup %2867  ;;  %v1437_v39 = vmul.f32 %v2866_v15, %v2862_v51  ;;  %v1436_v6 = vmul.f32 %v2866_v15, %v3471_v58 }
 0xabc   :  { %v1329_v52 = vmul.f32 %v2868_v60, %v2864_v53  ;;  %v2870_v2 = vpop.eup %2869  ;;  %v1328_v38 = vmul.f32 %v2868_v60, %v3476_v46 }
 0xabd   :  { %1439 = vrot.lane.b32.xlu1 %v1437_v39, %s2985_s13  ;;  %v1433_v3 = vadd.f32 1.0, %v2870_v2 }
 0xabf   :  { %2871 = vrcp.f32 %v1433_v3 }
 0xac1   :  { %1331 = vrot.lane.b32.xlu1 %v1329_v52, %s2985_s13 }
 0xac9   :  { %v2872_v7 = vpop.eup %2871 }
 0xb2f   :  { %v1440_v48 = vpop.permute.xlu1 %1439 }
 0xb30   :  { %v3517_v55 = vadd.f32 %v1440_v48, %v1436_v6 }
 0xb32   :  { %2873 = vtanh.f32 %v3517_v55 }
 0xb33   :  { %2875 = vpow2.f32 %v2238_v54  ;;  %v1332_v8 = vpop.permute.xlu1 %1331 }
 0xb34   :  { %v3522_v23 = vadd.f32 %v1332_v8, %v1328_v38 }
 0xb36   :  { %2877 = vtanh.f32 %v3522_v23 }
 0xb3c   :  { %v2874_v11 = vpop.eup %2873 }
 0xb3d   :  { %v1444_v16 = vmul.f32 %v2874_v11, %v2872_v7  ;;  %v2876_v17 = vpop.eup %2875 }
 0xb3e   :  { %v1325_v58 = vadd.f32 1.0, %v2876_v17 }
 0xb3f   :  { %1446 = vrot.lane.b32.xlu0 %v1444_v16, %s2985_s13 }
 0xb40   :  { %2879 = vrcp.f32 %v1325_v58  ;;  %v2878_v24 = vpop.eup %2877 }
 0xb4a   :  { %v2880_v28 = vpop.eup %2879 }
 0xb4b   :  { %v3525_v32 = vmul.f32 %v2880_v28, %v2878_v24 }
 0xbb1   :  { %v1447_v33 = vpop.permute.xlu0 %1446 }
 0xbb2   :  { %v1449_v42 = vsel %vm294_vm2, %v1447_v33, %v3525_v32  ;;  %2244 = vmatmul.mubr.msk.f32.vlgmr.msra.gmra.mrb[12].mxu0 %vm294_vm2, %v1447_v33 }
 0xbb3   :  { %1515 = vmatmul.mubr.f32.vlgmr.msra.gmra.mrb[8].mxu1 %v1449_v42  ;;  %2648 = vmatpush1.bf16.msra.mxu0 %v3087_v9 }
 0xbb4   :  { %2616 = vmatpush1.bf16.msra.mxu1 %v3227_v61  ;;  %2650 = vmatprep.subr.bf16.mxu0 %v3101_v14 }
 0xbb5   :  { %2618 = vmatprep.subr.bf16.mxu1 %v3229_v62  ;;  %1826 = vmatprep.mubr.f32.mxu0 %v2984_v0 }
 0xbb6   :  { %1720 = vmatprep.mubr.f32.mxu1 %v2984_v0 }
 0xbb7   :  { %2652 = vmatpush1.bf16.msra.mxu0 %v3116_v18 }
 0xbb8   :  { %2620 = vmatpush1.bf16.msra.mxu1 %v3233_v4  ;;  %2654 = vmatprep.subr.bf16.mxu0 %v3119_v19 }
 0xbb9   :  { %2622 = vmatprep.subr.bf16.mxu1 %v3236_v5 }
 0xbbb   :  { %2656 = vmatpush1.bf16.msra.mxu0 %v3143_v26 }
 0xbbc   :  { %2624 = vmatpush1.bf16.msra.mxu1 %v3239_v12  ;;  %2658 = vmatprep.subr.bf16.mxu0 %v3146_v27 }
 0xbbd   :  { %2626 = vmatprep.subr.bf16.mxu1 %v3242_v13 }
 0xbbf   :  { %2660 = vmatpush1.bf16.msra.mxu0 %v3160_v31 }
 0xbc0   :  { %2628 = vmatpush1.bf16.msra.mxu1 %v3245_v21  ;;  %2662 = vmatprep.subr.bf16.mxu0 %v3225_v57 }
 0xbc1   :  { %2630 = vmatprep.subr.bf16.mxu1 %v3248_v22 }
 0xbc4   :  { %2632 = vmatpush1.bf16.msra.mxu1 %v3251_v29 }
 0xbc5   :  { %2634 = vmatprep.subr.bf16.mxu1 %v3254_v30 }
 0xbc8   :  { %2636 = vmatpush1.bf16.msra.mxu1 %v3257_v36 }
 0xbc9   :  { %2638 = vmatprep.subr.bf16.mxu1 %v3260_v40 }
 0xbcc   :  { %2640 = vmatpush1.bf16.msra.mxu1 %v3263_v44 }
 0xbcd   :  { %2642 = vmatprep.subr.bf16.mxu1 %v3271_v59 }
 0xbd0   :  { %2644 = vmatpush1.bf16.msra.mxu1 %v3274_v1 }
 0xc85   :  { %v1622_v9 = vpop.f32.mrb[12].mxu0 }
 0xc86   :  { %v2721_v14 = vadd.f32 %v1622_v9, %v3209_v41  ;;  %v1516_v18 = vpop.f32.mrb[8].mxu1  ;;  %v1624_v19 = vpop.f32.mrb[13].mxu0 }
 0xc87   :  { %v1517_v26 = vadd.f32 %v1516_v18, %v3324_v43  ;;  %v1518_v27 = vpop.f32.mrb[9].mxu1  ;;  %v2722_v46 = vadd.f32 %v1624_v19, %v3215_v47 }
 0xc88   :  { %v2245_v31 = vmul.f32 -1.442695, %v2721_v14  ;;  %v1519_v35 = vadd.f32 %v1518_v27, %v3329_v56 }
 0xc89   :  { %v2242_v57 = vmul.f32 -1.442695, %v1517_v26  ;;  %v2246_v2 = vmul.f32 -1.442695, %v2722_v46 }
 0xc8a   :  { %2881 = vpow2.f32 %v2245_v31  ;;  %v2243_v38 = vmul.f32 -1.442695, %v1519_v35 }
 0xc8b   :  { %2883 = vpow2.f32 %v2242_v57 }
 0xc8c   :  { %2885 = vtanh.f32 %v2722_v46 }
 0xc8d   :  { %2887 = vtanh.f32 %v1519_v35 }
 0xc94   :  { %v2882_v49 = vpop.eup %2881 }
 0xc95   :  { %v2884_v50 = vpop.eup %2883  ;;  %v1632_v20 = vadd.f32 1.0, %v2882_v49 }
 0xc96   :  { %v1524_v51 = vadd.f32 1.0, %v2884_v50  ;;  %v2886_v53 = vpop.eup %2885 }
 0xc97   :  { %2889 = vrcp.f32 %v1632_v20  ;;  %v2888_v15 = vpop.eup %2887 }
 0xc98   :  { %2891 = vrcp.f32 %v1524_v51 }
 0xc99   :  { %2893 = vpow2.f32 %v2246_v2 }
 0xca1   :  { %v2890_v60 = vpop.eup %2889 }
 0xca2   :  { %v2892_v39 = vpop.eup %2891  ;;  %v1643_v52 = vmul.f32 %v2890_v60, %v2886_v53  ;;  %v1642_v48 = vmul.f32 %v2890_v60, %v3517_v55 }
 0xca3   :  { %v1535_v34 = vmul.f32 %v2892_v39, %v2888_v15  ;;  %v2894_v3 = vpop.eup %2893  ;;  %v1534_v58 = vmul.f32 %v2892_v39, %v3522_v23 }
 0xca4   :  { %1645 = vrot.lane.b32.xlu0 %v1643_v52, %s2985_s13  ;;  %v1639_v6 = vadd.f32 1.0, %v2894_v3 }
 0xca6   :  { %2895 = vrcp.f32 %v1639_v6 }
 0xca8   :  { %1537 = vrot.lane.b32.xlu0 %v1535_v34, %s2985_s13 }
 0xcb0   :  { %v2896_v16 = vpop.eup %2895 }
 0xd16   :  { %v1646_v7 = vpop.permute.xlu0 %1645 }
 0xd17   :  { %v3562_v11 = vadd.f32 %v1646_v7, %v1642_v48 }
 0xd19   :  { %2897 = vtanh.f32 %v3562_v11 }
 0xd1a   :  { %2899 = vpow2.f32 %v2243_v38  ;;  %v1538_v17 = vpop.permute.xlu0 %1537 }
 0xd1b   :  { %v3567_v28 = vadd.f32 %v1538_v17, %v1534_v58 }
 0xd1d   :  { %2901 = vtanh.f32 %v3567_v28 }
 0xd23   :  { %v2898_v54 = vpop.eup %2897 }
 0xd24   :  { %v1650_v8 = vmul.f32 %v2898_v54, %v2896_v16  ;;  %v2900_v24 = vpop.eup %2899  ;;  %v1983_v54 = vld [vmem:[%s3734_s8] sm:$0xff] }
 0xd25   :  { %v1531_v55 = vadd.f32 1.0, %v2900_v24 }
 0xd26   :  { %1652 = vrot.lane.b32.xlu1 %v1650_v8, %s2985_s13  ;;  %v1984_v8 = vld [vmem:[%s3734_s8 + $0x8] sm:$0xff] }
 0xd27   :  { %2903 = vrcp.f32 %v1531_v55  ;;  %v2902_v33 = vpop.eup %2901  ;;  %v2693_v38 = vpack.c.bf16 %v1984_v8, %v1983_v54 }
 0xd29   :  { %2694 = vmatprep.subr.bf16.mxu1 %v2693_v38 }
 0xd31   :  { %v2904_v42 = vpop.eup %2903 }
 0xd32   :  { %v3570_v9 = vmul.f32 %v2904_v42, %v2902_v33 }
 0xd98   :  { %v1653_v14 = vpop.permute.xlu1 %1652 }
 0xd99   :  { %v1655_v18 = vsel %vm294_vm2, %v1653_v14, %v3570_v9  ;;  %2249 = vmatmul.mubr.msk.f32.vlgmr.msra.gmra.mrb[14].mxu0 %vm294_vm2, %v1653_v14  ;;  %v1985_v14 = vld [vmem:[%s3734_s8 + $0x10] sm:$0xff] }
 0xd9a   :  { %1721 = vmatmul.mubr.f32.vlgmr.msra.gmra.mrb[10].mxu1 %v1655_v18  ;;  %2664 = vmatpush1.bf16.msra.mxu0 %v3227_v61  ;;  %v1986_v18 = vld [vmem:[%s3734_s8 + $0x18] sm:$0xff] }
 0xd9b   :  { %2666 = vmatprep.subr.bf16.mxu0 %v3229_v62  ;;  %1926 = vmatprep.mubr.f32.mxu0 %v2984_v0 }
 0xd9c   :  { %2696 = vmatpush3.bf16.msra.mxu1 %v2693_v38 }
 0xd9e   :  { %2668 = vmatpush1.bf16.msra.mxu0 %v3233_v4 }
 0xd9f   :  { %2670 = vmatprep.subr.bf16.mxu0 %v3236_v5 }
 0xda2   :  { %2672 = vmatpush1.bf16.msra.mxu0 %v3239_v12 }
 0xda3   :  { %2674 = vmatprep.subr.bf16.mxu0 %v3242_v13 }
 0xda6   :  { %2676 = vmatpush1.bf16.msra.mxu0 %v3245_v21 }
 0xda7   :  { %2678 = vmatprep.subr.bf16.mxu0 %v3248_v22 }
 0xdaa   :  { %2680 = vmatpush1.bf16.msra.mxu0 %v3251_v29 }
 0xdab   :  { %2682 = vmatprep.subr.bf16.mxu0 %v3254_v30 }
 0xdae   :  { %2684 = vmatpush1.bf16.msra.mxu0 %v3257_v36 }
 0xdaf   :  { %2686 = vmatprep.subr.bf16.mxu0 %v3260_v40 }
 0xdb2   :  { %2688 = vmatpush1.bf16.msra.mxu0 %v3263_v44 }
 0xdb3   :  { %2690 = vmatprep.subr.bf16.mxu0 %v3271_v59 }
 0xdb6   :  { %2692 = vmatpush1.bf16.msra.mxu0 %v3274_v1 }
 0xe6c   :  { %v1828_v0 = vpop.f32.mrb[14].mxu0 }
 0xe6d   :  { %v2723_v61 = vadd.f32 %v1828_v0, %v3209_v41  ;;  %v1722_v62 = vpop.f32.mrb[10].mxu1  ;;  %v1830_v4 = vpop.f32.mrb[15].mxu0  ;;  %v2697_v0 = vpack.c.bf16 %v1986_v18, %v1985_v14 }
 0xe6e   :  { %v1723_v5 = vadd.f32 %v1722_v62, %v3324_v43  ;;  %v1724_v12 = vpop.f32.mrb[11].mxu1  ;;  %v2724_v22 = vadd.f32 %v1830_v4, %v3215_v47  ;;  %v1989_v62 = vld [vmem:[%s3734_s8 + $0x30] sm:$0xff]  ;;  %v1990_v4 = vld [vmem:[%s3734_s8 + $0x38] sm:$0xff] }
 0xe6f   :  { %v2250_v13 = vmul.f32 -1.442695, %v2723_v61  ;;  %v1725_v29 = vadd.f32 %v1724_v12, %v3329_v56  ;;  %2698 = vmatprep.subr.bf16.mxu1 %v2697_v0  ;;  %v2705_v12 = vpack.c.bf16 %v1990_v4, %v1989_v62 }
 0xe70   :  { %v2247_v21 = vmul.f32 -1.442695, %v1723_v5  ;;  %v2251_v47 = vmul.f32 -1.442695, %v2724_v22  ;;  %2700 = vmatpush3.bf16.msra.mxu1 %v2697_v0 }
 0xe71   :  { %2905 = vpow2.f32 %v2250_v13  ;;  %v2248_v31 = vmul.f32 -1.442695, %v1725_v29 }
 0xe72   :  { %2907 = vpow2.f32 %v2247_v21 }
 0xe73   :  { %2909 = vtanh.f32 %v2724_v22 }
 0xe74   :  { %2911 = vtanh.f32 %v1725_v29 }
 0xe7b   :  { %v2906_v30 = vpop.eup %2905 }
 0xe7c   :  { %v2908_v36 = vpop.eup %2907  ;;  %v1838_v40 = vadd.f32 1.0, %v2906_v30 }
 0xe7d   :  { %v1730_v44 = vadd.f32 1.0, %v2908_v36  ;;  %v2910_v41 = vpop.eup %2909 }
 0xe7e   :  { %2913 = vrcp.f32 %v1838_v40  ;;  %v2912_v59 = vpop.eup %2911 }
 0xe7f   :  { %2915 = vrcp.f32 %v1730_v44 }
 0xe80   :  { %2917 = vpow2.f32 %v2251_v47 }
 0xe81   :  { %2919 = vpow2.f32 %v2248_v31 }
 0xe88   :  { %v2914_v1 = vpop.eup %2913 }
 0xe89   :  { %v2916_v23 = vpop.eup %2915  ;;  %v1849_v19 = vmul.f32 %v2914_v1, %v2910_v41  ;;  %v1848_v46 = vmul.f32 %v2914_v1, %v3562_v11 }
 0xe8a   :  { %v1741_v26 = vmul.f32 %v2916_v23, %v2912_v59  ;;  %v2918_v27 = vpop.eup %2917  ;;  %v1740_v51 = vmul.f32 %v2916_v23, %v3567_v28 }
 0xe8b   :  { %1851 = vrot.lane.b32.xlu1 %v1849_v19, %s2985_s13  ;;  %v1845_v57 = vadd.f32 1.0, %v2918_v27  ;;  %v2920_v20 = vpop.eup %2919 }
 0xe8c   :  { %1743 = vrot.lane.b32.xlu0 %v1741_v26, %s2985_s13  ;;  %v1737_v52 = vadd.f32 1.0, %v2920_v20 }
 0xe8d   :  { %2921 = vrcp.f32 %v1845_v57 }
 0xe97   :  { %v2922_v53 = vpop.eup %2921 }
 0xefd   :  { %v1852_v35 = vpop.permute.xlu1 %1851 }
 0xefe   :  { %v1854_v49 = vadd.f32 %v1852_v35, %v1848_v46  ;;  %v1744_v50 = vpop.permute.xlu0 %1743 }
 0xeff   :  { %v3599_v60 = vadd.f32 %v1744_v50, %v1740_v51 }
 0xf00   :  { %2923 = vtanh.f32 %v1854_v49 }
 0xf01   :  { %2925 = vtanh.f32 %v3599_v60 }
 0xf02   :  { %2927 = vrcp.f32 %v1737_v52 }
 0xf0a   :  { %v2924_v15 = vpop.eup %2923 }
 0xf0b   :  { %v1856_v39 = vmul.f32 %v2924_v15, %v2922_v53  ;;  %v2926_v34 = vpop.eup %2925  ;;  %v2128_v53 = vand.u32 127, %v63_v37 }
 0xf0c   :  { %v2928_v2 = vpop.eup %2927 }
 0xf0d   :  { %1858 = vrot.lane.b32.xlu1 %v1856_v39, %s2985_s13  ;;  %v1748_v3 = vmul.f32 %v2928_v2, %v2926_v34  ;;  %vm2129_vm3 = vcmp.eq.s32.totalorder %v2128_v53, 0 }
 0xf11   :  { %515 = vrot.lane.b32.xlu1 %v3351_v25, %s2985_s13 }
 0xf15   :  { %926 = vrot.lane.b32.xlu1 %v3441_v63, %s2985_s13 }
 0xf19   :  { %1338 = vrot.lane.b32.xlu1 %v3525_v32, %s2985_s13 }
 0xf1d   :  { %1750 = vrot.lane.b32.xlu1 %v1748_v3, %s2985_s13 }
 0xf21   :  { %1965 = vrot.lane.b32.xlu1 %v1854_v49, %s2985_s13  ;;  %v3683_v49 = vld [vmem:[%s3735_s9] ss:$0 sm:$0xff] }
 0xf7f   :  { %v1859_v6 = vpop.permute.xlu1 %1858 }
 0xf80   :  { %v1861_v48 = vsel %vm294_vm2, %v1859_v6, %v1748_v3  ;;  %1961 = vst.msk [vmem:[%s3737_s11] sm:$0xff] %vm294_vm2, %v1859_v6  ;;  %v2986_v3 = vmov -3.0  }
 0xf81   :  { %1927 = vmatmul.mubr.f32.vlgmr.msra.gmra.mrb[18].mxu0 %v1861_v48  ;;  %v2130_v6 = vsel %vm2129_vm3, 0.0, %v2986_v3  ;;  %v2987_v48 = vmov 3.0  }
 0xf83   :  { %v516_v25 = vpop.permute.xlu1 %515 }
 0xf84   :  { %518 = vst.msk [vmem:[#allocation3] sm:$0xff] %vm294_vm2, %v516_v25  ;;  %v2131_v25 = vsel %vm2129_vm3, 2.0, %v2987_v48 }
 0xf87   :  { %v927_v63 = vpop.permute.xlu1 %926 }
 0xf88   :  { %930 = vst.msk [vmem:[#allocation3 + $0x10] sm:$0xff] %vm294_vm2, %v927_v63 }
 0xf8b   :  { %v1339_v32 = vpop.permute.xlu1 %1338  ;;  %v1975_v7 = vld [vmem:[#allocation3] sm:$0xff] }
 0xf8c   :  { %1342 = vst.msk [vmem:[#allocation3 + $0x20] sm:$0xff] %vm294_vm2, %v1339_v32  ;;  %2297 = vmatprep.mubr.msk.f32.mxu1 %vm294_vm2, %v1975_v7  ;;  %v2132_v7 = vsub.f32 %v2131_v25, %v2130_v6 }
 0xf8f   :  { %v1751_v11 = vpop.permute.xlu1 %1750  ;;  %v1977_v23 = vld [vmem:[#allocation3 + $0x10] sm:$0xff] }
 0xf90   :  { %1754 = vst.msk [vmem:[#allocation3 + $0x30] sm:$0xff] %vm294_vm2, %v1751_v11 }
 0xf93   :  { %v1966_v16 = vpop.permute.xlu1 %1965  ;;  %v1979_v47 = vld [vmem:[#allocation3 + $0x20] sm:$0xff] }
 0xf94   :  { %1968 = vst.msk [vmem:[%s3738_s12] sm:$0xff] %vm294_vm2, %v1966_v16 }
 0xf97   :  { %v1981_v31 = vld [vmem:[#allocation3 + $0x30] sm:$0xff] }
0x1054   :  { %v1928_v17 = vpop.f32.mrb[18].mxu0 }
0x1055   :  { %v1929_v58 = vadd.f32 %v1928_v17, %v3324_v43  ;;  %v1930_v24 = vpop.f32.mrb[19].mxu0  ;;  %v1987_v43 = vld [vmem:[%s3734_s8 + $0x20] sm:$0xff] }
0x1056   :  { %v1931_v55 = vadd.f32 %v1930_v24, %v3329_v56  ;;  %v1988_v56 = vld [vmem:[%s3734_s8 + $0x28] sm:$0xff] }
0x1057   :  { %v2252_v28 = vmul.f32 -1.442695, %v1929_v58  ;;  %v2701_v61 = vpack.c.bf16 %v1988_v56, %v1987_v43 }
0x1058   :  { %v2253_v22 = vmul.f32 -1.442695, %v1931_v55 }
0x1059   :  { %2929 = vpow2.f32 %v2252_v28  ;;  %2702 = vmatprep.subr.bf16.mxu1 %v2701_v61 }
0x105a   :  { %2931 = vtanh.f32 %v1931_v55  ;;  %2704 = vmatpush3.bf16.msra.mxu1 %v2701_v61 }
0x105b   :  { %2706 = vmatprep.subr.bf16.mxu1 %v2705_v12 }
0x105e   :  { %2708 = vmatpush3.bf16.msra.mxu1 %v2705_v12 }
0x1063   :  { %v2930_v33 = vpop.eup %2929 }
0x1064   :  { %v1936_v42 = vadd.f32 1.0, %v2930_v33  ;;  %v2932_v5 = vpop.eup %2931 }
0x1066   :  { %2933 = vrcp.f32 %v1936_v42 }
0x1067   :  { %2935 = vpow2.f32 %v2253_v22 }
0x1070   :  { %v2934_v13 = vpop.eup %2933 }
0x1071   :  { %v1947_v21 = vmul.f32 %v2934_v13, %v2932_v5  ;;  %v2936_v29 = vpop.eup %2935  ;;  %v1946_v36 = vmul.f32 %v2934_v13, %v3599_v60 }
0x1072   :  { %v1943_v30 = vadd.f32 1.0, %v2936_v29 }
0x1073   :  { %1949 = vrot.lane.b32.xlu0 %v1947_v21, %s2985_s13 }
0x1074   :  { %2937 = vrcp.f32 %v1943_v30 }
0x1077   :  { %720 = vrot.lane.b32.xlu0 %v3387_v45, %s2985_s13 }
0x107b   :  { %1132 = vrot.lane.b32.xlu0 %v3479_v10, %s2985_s13 }
0x107e   :  { %v2938_v10 = vpop.eup %2937 }
0x107f   :  { %1544 = vrot.lane.b32.xlu0 %v3570_v9, %s2985_s13 }
0x10e5   :  { %v1950_v40 = vpop.permute.xlu0 %1949 }
0x10e6   :  { %v1952_v44 = vadd.f32 %v1950_v40, %v1946_v36 }
0x10e8   :  { %2939 = vtanh.f32 %v1952_v44 }
0x10e9   :  { %v721_v41 = vpop.permute.xlu0 %720 }
0x10ea   :  { %724 = vst.msk [vmem:[#allocation3 + $0x8] sm:$0xff] %vm294_vm2, %v721_v41 }
0x10ed   :  { %v1133_v45 = vpop.permute.xlu0 %1132 }
0x10ee   :  { %1136 = vst.msk [vmem:[#allocation3 + $0x18] sm:$0xff] %vm294_vm2, %v1133_v45 }
0x10f1   :  { %v1545_v59 = vpop.permute.xlu0 %1544  ;;  %v1976_v1 = vld [vmem:[#allocation3 + $0x8] sm:$0xff] }
0x10f2   :  { %v2940_v9 = vpop.eup %2939  ;;  %1548 = vst.msk [vmem:[#allocation3 + $0x28] sm:$0xff] %vm294_vm2, %v1545_v59  ;;  %2298 = vmatmul.mubr.msk.f32.vlgmr.msra.gmra.mrb[12].mxu1 %vm294_vm2, %v1976_v1 }
0x10f3   :  { %2300 = vmatprep.mubr.msk.f32.mxu1 %vm294_vm2, %v1977_v23  ;;  %v1954_v19 = vmul.f32 %v2940_v9, %v2938_v10 }
0x10f5   :  { %1956 = vrot.lane.b32.xlu0 %v1954_v19, %s2985_s13  ;;  %v1978_v26 = vld [vmem:[#allocation3 + $0x18] sm:$0xff] }
0x10f6   :  { %2301 = vmatmul.mubr.msk.f32.gmra.mrb[14].mxu1 %vm294_vm2, %v1978_v26 }
0x10f7   :  { %2303 = vmatprep.mubr.msk.f32.mxu1 %vm294_vm2, %v1979_v47 }
0x10f9   :  { %1970 = vrot.lane.b32.xlu0 %v1952_v44, %s2985_s13  ;;  %v1980_v27 = vld [vmem:[#allocation3 + $0x28] sm:$0xff] }
0x10fa   :  { %2304 = vmatmul.mubr.msk.f32.gmra.mrb[16].mxu1 %vm294_vm2, %v1980_v27 }
0x10fb   :  { %2306 = vmatprep.mubr.msk.f32.mxu1 %vm294_vm2, %v1981_v31 }
0x1167   :  { %v1957_v57 = vpop.permute.xlu0 %1956 }
0x1168   :  { %1960 = vst.msk [vmem:[#allocation3 + $0x38] sm:$0xff] %vm294_vm2, %v1957_v57  ;;  %2254 = vst.msk [vmem:[%s3737_s11 + $0x8] sm:$0xff] %vm294_vm2, %v1957_v57 }
0x116b   :  { %v1971_v46 = vpop.permute.xlu0 %1970 }
0x116c   :  { %2255 = vst.msk [vmem:[%s3738_s12 + $0x8] sm:$0xff] %vm294_vm2, %v1971_v46 }
0x116f   :  { %v1982_v35 = vld [vmem:[#allocation3 + $0x38] sm:$0xff] }
0x1170   :  { %2307 = vmatmul.mubr.msk.f32.gmra.mrb[18].mxu1 %vm294_vm2, %v1982_v35 }
0x11c5   :  { %v2299_v50 = vpop.f32.mrb[12].mxu1 }
0x11c6   :  { %v2094_v20 = vadd.f32 %v2299_v50, %v3683_v49  ;;  %v2088_v51 = vpop.f32.mrb[13].mxu1 }
0x11c7   :  { %v2089_v15 = vadd.f32 %v3683_v49, %v2088_v51 }
0x11c8   :  { %2941 = vtanh.f32 %v2094_v20 }
0x11c9   :  { %2943 = vtanh.f32 %v2089_v15  ;;  %v2302_v60 = vpop.f32.mrb[14].mxu1 }
0x11ca   :  { %v2104_v39 = vadd.f32 %v2302_v60, %v3683_v49  ;;  %v2098_v52 = vpop.f32.mrb[15].mxu1 }
0x11cb   :  { %v2099_v34 = vadd.f32 %v3683_v49, %v2098_v52 }
0x11cc   :  { %2945 = vtanh.f32 %v2104_v39 }
0x11cd   :  { %2947 = vtanh.f32 %v2099_v34  ;;  %v2305_v2 = vpop.f32.mrb[16].mxu1 }
0x11ce   :  { %v2114_v37 = vadd.f32 %v2305_v2, %v3683_v49  ;;  %v2108_v63 = vpop.f32.mrb[17].mxu1 }
0x11cf   :  { %v2109_v32 = vadd.f32 %v3683_v49, %v2108_v63 }
0x11d0   :  { %2949 = vtanh.f32 %v2114_v37 }
0x11d1   :  { %2951 = vtanh.f32 %v2109_v32 }
0x11d2   :  { %v2942_v11 = vpop.eup %2941 }
0x11d3   :  { %v2944_v16 = vpop.eup %2943  ;;  %v2142_v54 = vadd.f32 1.0, %v2942_v11 }
0x11d4   :  { %v2141_v8 = vadd.f32 1.0, %v2944_v16 }
0x11d5   :  { %v2150_v38 = vmul.f32 %v2142_v54, %v2132_v7 }
0x11d6   :  { %v2946_v17 = vpop.eup %2945  ;;  %v2149_v58 = vmul.f32 %v2141_v8, %v2132_v7 }
0x11d7   :  { %v2948_v24 = vpop.eup %2947  ;;  %v2158_v28 = vmul.f32 0.5, %v2150_v38  ;;  %v2144_v55 = vadd.f32 1.0, %v2946_v17 }
0x11d8   :  { %v2157_v33 = vmul.f32 0.5, %v2149_v58  ;;  %v2143_v42 = vadd.f32 1.0, %v2948_v24 }
0x11d9   :  { %v2166_v14 = vadd.f32 %v2158_v28, %v2130_v6  ;;  %v2152_v18 = vmul.f32 %v2144_v55, %v2132_v7 }
0x11da   :  { %v2950_v0 = vpop.eup %2949  ;;  %v2165_v43 = vadd.f32 %v2157_v33, %v2130_v6  ;;  %v2151_v56 = vmul.f32 %v2143_v42, %v2132_v7 }
0x11db   :  { %v2952_v61 = vpop.eup %2951  ;;  %2175 = vst.msk [vmem:[%s3736_s10 + $0x8] sm:$0xff] %vm2173_vm4, %v2166_v14  ;;  %v2160_v62 = vmul.f32 0.5, %v2152_v18  ;;  %v2146_v4 = vadd.f32 1.0, %v2950_v0 }
0x11dc   :  { %2174 = vst.msk [vmem:[%s3736_s10] sm:$0xff] %vm2173_vm4, %v2165_v43  ;;  %v2159_v5 = vmul.f32 0.5, %v2151_v56  ;;  %v2145_v12 = vadd.f32 1.0, %v2952_v61 }
0x11dd   :  { %v2168_v13 = vadd.f32 %v2160_v62, %v2130_v6  ;;  %v2154_v21 = vmul.f32 %v2146_v4, %v2132_v7 }
0x11de   :  { %v2167_v22 = vadd.f32 %v2159_v5, %v2130_v6  ;;  %v2153_v29 = vmul.f32 %v2145_v12, %v2132_v7 }
0x11df   :  { %2177 = vst.msk [vmem:[%s3736_s10 + $0x18] sm:$0xff] %vm2173_vm4, %v2168_v13  ;;  %v2162_v30 = vmul.f32 0.5, %v2154_v21 }
0x11e0   :  { %2176 = vst.msk [vmem:[%s3736_s10 + $0x10] sm:$0xff] %vm2173_vm4, %v2167_v22  ;;  %v2161_v36 = vmul.f32 0.5, %v2153_v29 }
0x11e1   :  { %v2170_v40 = vadd.f32 %v2162_v30, %v2130_v6 }
0x11e2   :  { %v2169_v44 = vadd.f32 %v2161_v36, %v2130_v6 }
0x11e3   :  { %2179 = vst.msk [vmem:[%s3736_s10 + $0x28] sm:$0xff] %vm2173_vm4, %v2170_v40 }
0x11e4   :  { %2178 = vst.msk [vmem:[%s3736_s10 + $0x20] sm:$0xff] %vm2173_vm4, %v2169_v44 }
0x1243   :  { %v2308_v41 = vpop.f32.mrb[18].mxu1 }
0x1244   :  { %v2124_v45 = vadd.f32 %v2308_v41, %v3683_v49  ;;  %v2118_v10 = vpop.f32.mrb[19].mxu1 }
0x1245   :  { %v2119_v59 = vadd.f32 %v3683_v49, %v2118_v10 }
0x1246   :  { %2953 = vtanh.f32 %v2124_v45 }
0x1247   :  { %2955 = vtanh.f32 %v2119_v59 }
0x1250   :  { %v2954_v1 = vpop.eup %2953 }
0x1251   :  { %v2956_v9 = vpop.eup %2955  ;;  %v2148_v23 = vadd.f32 1.0, %v2954_v1 }
0x1252   :  { %v2147_v19 = vadd.f32 1.0, %v2956_v9 }
0x1253   :  { %v2156_v26 = vmul.f32 %v2148_v23, %v2132_v7 }
0x1254   :  { %v2155_v47 = vmul.f32 %v2147_v19, %v2132_v7 }
0x1255   :  { %v2164_v27 = vmul.f32 0.5, %v2156_v26 }
0x1256   :  { %v2163_v31 = vmul.f32 0.5, %v2155_v47 }
0x1257   :  { %v2172_v57 = vadd.f32 %v2164_v27, %v2130_v6 }
0x1258   :  { %v2171_v46 = vadd.f32 %v2163_v31, %v2130_v6 }
0x1259   :  { %2181 = vst.msk [vmem:[%s3736_s10 + $0x38] sm:$0xff] %vm2173_vm4, %v2172_v57 }
0x125a   :  { %2180 = vst.msk [vmem:[%s3736_s10 + $0x30] sm:$0xff] %vm2173_vm4, %v2171_v46 }
0x125b   :  { %2194 = vsyncpa [#allocation5], 1 }

</bundles_post_ra>
